<compile_context>
chip_gen: v6e
topology: v6e:2x2x1
jax: 0.10.0
libtpu: 0.0.40
codegen_flags: <defaults>
</compile_context>

<pallas_src>
import numpy as np
import jax
import jax.numpy as jnp
from jax.experimental import pallas as pl

# ----------------------------- configuration --------------------------------
B = 2            # batch
C = 8            # in_features (channels)
H = W = 16       # spatial
S_R = 8          # s_r (adaptive max-pool output size)
C_RED = 4        # c_reduction
CR = C // C_RED  # 2
S_HID = 8        # hidden size of the spatial MLP (hard-coded in the module)
WC = W * C       # 128  lane dimension
SS = S_R * S_R   # 64   pooled spatial positions
SRC = S_R * C    # 64   lanes of the pooled tile
MJ = S_HID * S_R # 64   rows of the spatial-MLP mask-trick intermediate (per image)
BH = B * H       # 32   activation sublanes (batch folded)
BSR = B * S_R    # 16
BMJ = B * MJ     # 128
BSS = B * SS     # 128
BSH = B * S_HID  # 16
NPAD = 16        # lane padding of the channel-MLP constants
EPS = 1e-5

assert H == 2 * S_R and W == 2 * S_R      # 2x2 pooling windows assumed below

# Row offsets inside the packed constant arrays (all multiples of 8 -> aligned slices).
CW_D2, CW_D3, CW_AVG, CW_WC2, CW_R8 = 0, BH, 2 * BH, 3 * BH, 3 * BH + NPAD
C64_KE, C64_KO, C64_MSK = 0, WC, 2 * WC
C32_SH0, C32_SH2, C32_SE, C32_SO = 0, BH, 2 * BH, 2 * BH + BSR
C16_L1, C16_WS2, C16_CSEL, C16_WC1 = 0, BMJ, 2 * BMJ, 2 * BMJ + SRC


# ------------------------------ fused Pallas kernel ---------------------------
def sce_fused_kernel(x_ref, mconv_ref, cw_ref, c64_ref, c32_ref, c16_ref, out_ref):
    f32 = jnp.float32
    x = x_ref[...]                                        # (BH, WC): conv input + residual
    sh0 = c32_ref[C32_SH0:C32_SH0 + BH, :]                # within-image row shift, dy=0
    sh2 = c32_ref[C32_SH2:C32_SH2 + BH, :]                # within-image row shift, dy=2

    def conv3x3(t, lane_off):
        # y = u1 + Shift0 @ u0 + Shift2 @ u2, with u_dy = t @ M_dy (BN scales folded in).
        u = jnp.dot(t, mconv_ref[:, lane_off:lane_off + 3 * WC],
                    preferred_element_type=f32)           # (BH, 3*WC)
        return (u[:, WC:2 * WC]
                + jnp.dot(sh0, u[:, 0:WC], preferred_element_type=f32)
                + jnp.dot(sh2, u[:, 2 * WC:3 * WC], preferred_element_type=f32))

    # conv block: BN1 -> conv3x3 -> BN2 -> ReLU -> conv3x3 -> BN3 (biases/shifts in D2/D3)
    t = jnp.maximum(conv3x3(x, 0) + cw_ref[CW_D2:CW_D2 + BH, :], 0.0)
    a = conv3x3(t, 3 * WC) + cw_ref[CW_D3:CW_D3 + BH, :]                       # (BH, WC)

    # --- SE: adaptive max-pool 16x16 -> 8x8 via row / lane pair-selection matmuls ---
    e = jnp.dot(c32_ref[C32_SE:C32_SE + BSR, :], a, preferred_element_type=f32)
    o = jnp.dot(c32_ref[C32_SO:C32_SO + BSR, :], a, preferred_element_type=f32)
    m8 = jnp.maximum(e, o)                                                     # (BSR, WC)
    pool8 = jnp.maximum(
        jnp.dot(m8, c64_ref[C64_KE:C64_KE + WC, :], preferred_element_type=f32),
        jnp.dot(m8, c64_ref[C64_KO:C64_KO + WC, :], preferred_element_type=f32))  # (BSR, SRC)

    # --- spatial MLP Linear(SS->8) -> ReLU -> Linear(8->SS) -> Sigmoid (batched mask trick) ---
    b1m = jnp.dot(c16_ref[C16_L1:C16_L1 + BMJ, :], pool8, preferred_element_type=f32)
    b1m = b1m * c64_ref[C64_MSK:C64_MSK + BMJ, :]                              # keep j'==j
    g8 = jnp.dot(cw_ref[CW_R8:CW_R8 + BSH, :], b1m, preferred_element_type=f32)      # (BSH, SRC)
    hmat = jnp.maximum(
        jnp.dot(g8, c16_ref[C16_CSEL:C16_CSEL + SRC, :], preferred_element_type=f32), 0.0)
    s2 = jax.nn.sigmoid(
        jnp.dot(c16_ref[C16_WS2:C16_WS2 + BSS, :], hmat, preferred_element_type=f32))  # (BSS, NPAD)

    # --- avg-pool (1/SS folded) -> channel MLP -> sigmoid gate, row-expanded to BH rows ---
    y = jnp.dot(cw_ref[CW_AVG:CW_AVG + BH, :], s2, preferred_element_type=f32)         # (BH, NPAD)
    z = jnp.maximum(
        jnp.dot(y, c16_ref[C16_WC1:C16_WC1 + NPAD, :], preferred_element_type=f32), 0.0)
    gate = jax.nn.sigmoid(
        jnp.dot(z, cw_ref[CW_WC2:CW_WC2 + NPAD, :], preferred_element_type=f32))       # (BH, WC)

    # SE gate, out * tanh(out), residual
    scaled = a * gate
    out_ref[...] = x + scaled * jnp.tanh(scaled)


# ------------------------------ pallas_call wrapper ---------------------------
@jax.jit
def _sce_forward_jit(x_nhwc, mconv, cw, c64, c32, c16):
    # NHWC -> (B*H, W*C) is row-major compatible: a free reshape, no transpose / relayout.
    x_rows = x_nhwc.reshape(BH, WC)
    out_rows = pl.pallas_call(
        sce_fused_kernel,
        out_shape=jax.ShapeDtypeStruct((BH, WC), jnp.float32),
    )(x_rows, mconv, cw, c64, c32, c16)
    return out_rows.reshape(B, H, W, C)


def sce_block_forward(x_nhwc, consts):
    """consts = build_constants(params): build ONCE and reuse for every forward call."""
    return _sce_forward_jit(x_nhwc, *consts)


# ------------------------- parameter preprocessing (glue) ---------------------
def _bn_affine_np(gamma, beta, mean, var):
    g = np.asarray(gamma, np.float32); b = np.asarray(beta, np.float32)
    m = np.asarray(mean, np.float32); v = np.asarray(var, np.float32)
    s = g / np.sqrt(v + EPS)
    return s, b - m * s


def _conv_lane_mats_np(w_eff):
    """(3,3,Cin,Cout) -> (3, WC, WC): conv3x3_pad1 on an (H, W*C) image is
    sum_dy Shift_dy @ (x @ M[dy]); zero W-padding encoded in M, H-padding in Shift."""
    m = np.zeros((3, WC, WC), np.float32)
    for dy in range(3):
        for wo in range(W):
            for dx in range(3):
                p = wo + dx - 1
                if 0 <= p < W:
                    m[dy, p * C:(p + 1) * C, wo * C:(wo + 1) * C] = w_eff[dy, dx]
    return m


def _block_diag_b(m):
    """Tile a per-image matrix into a batch block-diagonal one (no cross-image bleed)."""
    r, c = m.shape
    out = np.zeros((B * r, B * c), np.float32)
    for b in range(B):
        out[b * r:(b + 1) * r, b * c:(b + 1) * c] = m
    return out


def build_constants(p):
    """Host-side constant folding + a single device upload.  Call ONCE per parameter
    set (perf-review item #1) and pass the returned tuple to sce_block_forward."""
    w1 = np.asarray(p['w1'], np.float32); b1 = np.asarray(p['b1'], np.float32)
    w2 = np.asarray(p['w2'], np.float32); b2 = np.asarray(p['b2'], np.float32)
    s1, h1 = _bn_affine_np(*p['bn1'])
    s2, h2 = _bn_affine_np(*p['bn2'])
    s3, h3 = _bn_affine_np(*p['bn3'])

    # BN1 scale folded into conv1 input channels, BN2 scale into conv1 output channels,
    # BN3 scale into conv2 output channels.
    m1 = _conv_lane_mats_np(w1 * s1[None, None, :, None] * s2[None, None, None, :])
    m2 = _conv_lane_mats_np(w2 * s3[None, None, None, :])
    mconv = np.concatenate([m1[0], m1[1], m1[2], m2[0], m2[1], m2[2]], axis=1)  # (WC, 6*WC)

    # Additive maps: D2 = (conv1_nobias(BN1-shift image) + b1)*s2 + h2 (border aware),
    #                D3 = b2*s3 + h3 (per channel); both tiled over the folded batch rows.
    wsum = np.einsum('yxio,i->yxo', w1, h1)                       # (3,3,C)
    k1 = np.zeros((H, W, C), np.float32)
    for dy in range(3):
        vh = ((np.arange(H) + dy - 1 >= 0) & (np.arange(H) + dy - 1 < H)).astype(np.float32)
        for dx in range(3):
            vw = ((np.arange(W) + dx - 1 >= 0) & (np.arange(W) + dx - 1 < W)).astype(np.float32)
            k1 += vh[:, None, None] * vw[None, :, None] * wsum[dy, dx][None, None, :]
    d2t = np.tile(((k1 + b1) * s2 + h2).reshape(H, WC), (B, 1))                 # (BH, WC)
    d3t = np.tile(np.tile(b2 * s3 + h3, W)[None, :], (BH, 1))                   # (BH, WC)

    # Per-image avg-pool (1/SS folded) + row expansion to BH rows, in one matrix.
    avgsel = np.kron(np.eye(B, dtype=np.float32), np.ones((H, SS), np.float32)) / SS  # (BH, BSS)

    # Channel-MLP second layer with the gate lane-tiling folded in (sigmoid commutes).
    wc2 = np.asarray(p['wc2'], np.float32)                        # (CR, C)
    wc2_t = np.zeros((NPAD, WC), np.float32)
    wc2_t[:CR, :] = np.tile(wc2, (1, W))

    # Spatial-MLP mask-trick constants (block-diagonal batched versions).
    ws1 = np.asarray(p['ws1'], np.float32)                        # (SS, S_HID), row = i*S_R+j
    ws2 = np.asarray(p['ws2'], np.float32)                        # (S_HID, SS)
    l1 = ws1.reshape(S_R, S_R, S_HID).transpose(2, 1, 0).reshape(MJ, S_R)       # [m*S_R+j, i]
    r8 = (np.arange(MJ)[None, :] // S_R == np.arange(S_HID)[:, None]).astype(np.float32)
    msk = ((np.arange(MJ)[:, None] % S_R) == (np.arange(SRC)[None, :] // C)).astype(np.float32)

    cw = np.concatenate([d2t, d3t, avgsel, wc2_t, _block_diag_b(r8)], axis=0)   # (128, 128)

    # 2x2 pooling lane selectors (even / odd column C-blocks) + mask-trick mask.
    ke = np.zeros((WC, SRC), np.float32); ko = np.zeros((WC, SRC), np.float32)
    for j in range(S_R):
        ke[2 * j * C:(2 * j + 1) * C, j * C:(j + 1) * C] = np.eye(C)
        ko[(2 * j + 1) * C:(2 * j + 2) * C, j * C:(j + 1) * C] = np.eye(C)
    c64 = np.concatenate([ke, ko, np.tile(msk, (B, 1))], axis=0)                # (384, 64)

    # Within-image conv row shifts + even/odd pooling row selectors, block-diag over batch.
    se = np.zeros((S_R, H), np.float32); se[np.arange(S_R), 2 * np.arange(S_R)] = 1.0
    so = np.zeros((S_R, H), np.float32); so[np.arange(S_R), 2 * np.arange(S_R) + 1] = 1.0
    c32 = np.concatenate([_block_diag_b(np.eye(H, k=-1, dtype=np.float32)),
                          _block_diag_b(np.eye(H, k=1, dtype=np.float32)),
                          _block_diag_b(se), _block_diag_b(so)], axis=0)        # (96, 32)

    # Spatial-MLP weights (block-diag), channel selector, channel-MLP first layer (padded).
    c8sel = np.zeros((SRC, NPAD), np.float32)
    c8sel[np.arange(SRC), np.arange(SRC) % C] = 1.0
    wc1p = np.zeros((NPAD, NPAD), np.float32)
    wc1p[:C, :CR] = np.asarray(p['wc1'], np.float32)
    c16 = np.concatenate([_block_diag_b(l1), _block_diag_b(ws2.T), c8sel, wc1p],
                         axis=0)                                                # (336, 16)

    to_dev = lambda a: jnp.asarray(np.ascontiguousarray(a, np.float32))
    return tuple(map(to_dev, (mconv, cw, c64, c32, c16)))


# --------------------------- pure-JAX reference (NCHW) ------------------------
def reference_forward(x_nchw, p):
    def bn(t, g, b, m, v):
        s = g / jnp.sqrt(v + EPS)
        return t * s[None, :, None, None] + (b - m * s)[None, :, None, None]

    def conv(t, w, b):
        o = jax.lax.conv_general_dilated(t, w, (1, 1), 'SAME',
                                         dimension_numbers=('NCHW', 'HWIO', 'NCHW'))
        return o + b[None, :, None, None]

    t = bn(x_nchw, *p['bn1'])
    t = conv(t, p['w1'], p['b1'])
    t = bn(t, *p['bn2'])
    t = jnp.maximum(t, 0.0)
    t = conv(t, p['w2'], p['b2'])
    out = bn(t, *p['bn3'])
    pooled = out.reshape(B, C, S_R, H // S_R, S_R, W // S_R).max(axis=(3, 5)).reshape(B, C, SS)
    h = jnp.maximum(pooled @ p['ws1'], 0.0)
    ssig = jax.nn.sigmoid(h @ p['ws2'])
    y = ssig.mean(axis=-1)
    z = jnp.maximum(y @ p['wc1'], 0.0)
    yc = jax.nn.sigmoid(z @ p['wc2'])
    scaled = out * yc[:, :, None, None]
    act = scaled * jnp.tanh(scaled)
    return x_nchw + act


# ----------------------------------- main ------------------------------------
if __name__ == "__main__":
    key = jax.random.PRNGKey(0)
    ks = jax.random.split(key, 12)

    def bn_params(k):
        k1, k2, k3, k4 = jax.random.split(k, 4)
        gamma = 1.0 + 0.1 * jax.random.normal(k1, (C,), jnp.float32)
        beta = 0.1 * jax.random.normal(k2, (C,), jnp.float32)
        mean = 0.1 * jax.random.normal(k3, (C,), jnp.float32)
        var = jax.random.uniform(k4, (C,), jnp.float32, 0.5, 1.5)
        return gamma, beta, mean, var

    params = {
        'bn1': bn_params(ks[1]),
        'bn2': bn_params(ks[2]),
        'bn3': bn_params(ks[3]),
        'w1': 0.2 * jax.random.normal(ks[4], (3, 3, C, C), jnp.float32),
        'b1': 0.1 * jax.random.normal(ks[5], (C,), jnp.float32),
        'w2': 0.2 * jax.random.normal(ks[6], (3, 3, C, C), jnp.float32),
        'b2': 0.1 * jax.random.normal(ks[7], (C,), jnp.float32),
        'ws1': 0.2 * jax.random.normal(ks[8], (SS, S_HID), jnp.float32),
        'ws2': 0.2 * jax.random.normal(ks[9], (S_HID, SS), jnp.float32),
        'wc1': 0.3 * jax.random.normal(ks[10], (C, CR), jnp.float32),
        'wc2': 0.3 * jax.random.normal(ks[11], (CR, C), jnp.float32),
    }

    x_nchw = jax.random.normal(ks[0], (B, C, H, W), jnp.float32)
    x_nhwc = jnp.transpose(x_nchw, (0, 2, 3, 1))     # test-harness relayout (not in forward)

    consts = build_constants(params)                 # built + uploaded ONCE, reused per call
    out_nhwc = sce_block_forward(x_nhwc, consts)
    out_nhwc = jax.block_until_ready(out_nhwc)

    ref = reference_forward(x_nchw, params)
    out_nchw = jnp.transpose(out_nhwc, (0, 3, 1, 2))
    err = float(jnp.max(jnp.abs(out_nchw - ref)))
    if not (err < 2e-3):
        raise AssertionError(f"kernel/reference mismatch: max abs err = {err}")
    print("KERNEL_OK")
</pallas_src>

<mosaic_0001>
module attributes {stable_mosaic.version = 11 : i64} {
  func.func @sce_fused_kernel(%arg0: memref<32x128xf32, #tpu.memory_space<vmem>>, %arg1: memref<128x768xf32, #tpu.memory_space<vmem>>, %arg2: memref<128x128xf32, #tpu.memory_space<vmem>>, %arg3: memref<384x64xf32, #tpu.memory_space<vmem>>, %arg4: memref<96x32xf32, #tpu.memory_space<vmem>>, %arg5: memref<336x16xf32, #tpu.memory_space<vmem>>, %arg6: memref<32x128xf32, #tpu.memory_space<vmem>>) attributes {dimension_semantics = [], scalar_prefetch = 0 : i64, scratch_operands = 0 : i64, tpu.core_type = #tpu.core_type<tc>} {
    %c0 = arith.constant 0 : index
    %c0_0 = arith.constant 0 : index
    %0 = vector.load %arg0[%c0, %c0_0] : memref<32x128xf32, #tpu.memory_space<vmem>>, vector<32x128xf32>
    %c0_1 = arith.constant 0 : index
    %c0_2 = arith.constant 0 : index
    %1 = vector.load %arg4[%c0_1, %c0_2] : memref<96x32xf32, #tpu.memory_space<vmem>>, vector<32x32xf32>
    %c32 = arith.constant 32 : index
    %c0_3 = arith.constant 0 : index
    %2 = vector.load %arg4[%c32, %c0_3] : memref<96x32xf32, #tpu.memory_space<vmem>>, vector<32x32xf32>
    %c0_4 = arith.constant 0 : index
    %c0_5 = arith.constant 0 : index
    %3 = vector.load %arg1[%c0_4, %c0_5] : memref<128x768xf32, #tpu.memory_space<vmem>>, vector<128x384xf32>
    %cst = arith.constant dense<0.000000e+00> : vector<32x384xf32>
    %4 = tpu.matmul %0, %3, %cst {dimension_numbers = #tpu.dot_dimension_numbers<[1], [0], [0], [1], [0, 0, 1, 1], [], []>} : vector<32x128xf32>, vector<128x384xf32>, vector<32x384xf32> -> vector<32x384xf32>
    %5 = vector.extract_strided_slice %4 {offsets = [0, 128], sizes = [32, 128], strides = [1, 1]} : vector<32x384xf32> to vector<32x128xf32>
    %6 = vector.extract_strided_slice %4 {offsets = [0, 0], sizes = [32, 128], strides = [1, 1]} : vector<32x384xf32> to vector<32x128xf32>
    %cst_6 = arith.constant dense<0.000000e+00> : vector<32x128xf32>
    %7 = tpu.matmul %1, %6, %cst_6 {dimension_numbers = #tpu.dot_dimension_numbers<[1], [0], [0], [1], [0, 0, 1, 1], [], []>} : vector<32x32xf32>, vector<32x128xf32>, vector<32x128xf32> -> vector<32x128xf32>
    %8 = arith.addf %5, %7 : vector<32x128xf32>
    %9 = vector.extract_strided_slice %4 {offsets = [0, 256], sizes = [32, 128], strides = [1, 1]} : vector<32x384xf32> to vector<32x128xf32>
    %cst_7 = arith.constant dense<0.000000e+00> : vector<32x128xf32>
    %10 = tpu.matmul %2, %9, %cst_7 {dimension_numbers = #tpu.dot_dimension_numbers<[1], [0], [0], [1], [0, 0, 1, 1], [], []>} : vector<32x32xf32>, vector<32x128xf32>, vector<32x128xf32> -> vector<32x128xf32>
    %11 = arith.addf %8, %10 : vector<32x128xf32>
    %c0_8 = arith.constant 0 : index
    %c0_9 = arith.constant 0 : index
    %12 = vector.load %arg2[%c0_8, %c0_9] : memref<128x128xf32, #tpu.memory_space<vmem>>, vector<32x128xf32>
    %13 = arith.addf %11, %12 : vector<32x128xf32>
    %cst_10 = arith.constant 0.000000e+00 : f32
    %14 = vector.broadcast %cst_10 : f32 to vector<32x128xf32>
    %15 = arith.maximumf %13, %14 : vector<32x128xf32>
    %c0_11 = arith.constant 0 : index
    %c384 = arith.constant 384 : index
    %16 = vector.load %arg1[%c0_11, %c384] : memref<128x768xf32, #tpu.memory_space<vmem>>, vector<128x384xf32>
    %cst_12 = arith.constant dense<0.000000e+00> : vector<32x384xf32>
    %17 = tpu.matmul %15, %16, %cst_12 {dimension_numbers = #tpu.dot_dimension_numbers<[1], [0], [0], [1], [0, 0, 1, 1], [], []>} : vector<32x128xf32>, vector<128x384xf32>, vector<32x384xf32> -> vector<32x384xf32>
    %18 = vector.extract_strided_slice %17 {offsets = [0, 128], sizes = [32, 128], strides = [1, 1]} : vector<32x384xf32> to vector<32x128xf32>
    %19 = vector.extract_strided_slice %17 {offsets = [0, 0], sizes = [32, 128], strides = [1, 1]} : vector<32x384xf32> to vector<32x128xf32>
    %cst_13 = arith.constant dense<0.000000e+00> : vector<32x128xf32>
    %20 = tpu.matmul %1, %19, %cst_13 {dimension_numbers = #tpu.dot_dimension_numbers<[1], [0], [0], [1], [0, 0, 1, 1], [], []>} : vector<32x32xf32>, vector<32x128xf32>, vector<32x128xf32> -> vector<32x128xf32>
    %21 = arith.addf %18, %20 : vector<32x128xf32>
    %22 = vector.extract_strided_slice %17 {offsets = [0, 256], sizes = [32, 128], strides = [1, 1]} : vector<32x384xf32> to vector<32x128xf32>
    %cst_14 = arith.constant dense<0.000000e+00> : vector<32x128xf32>
    %23 = tpu.matmul %2, %22, %cst_14 {dimension_numbers = #tpu.dot_dimension_numbers<[1], [0], [0], [1], [0, 0, 1, 1], [], []>} : vector<32x32xf32>, vector<32x128xf32>, vector<32x128xf32> -> vector<32x128xf32>
    %24 = arith.addf %21, %23 : vector<32x128xf32>
    %c32_15 = arith.constant 32 : index
    %c0_16 = arith.constant 0 : index
    %25 = vector.load %arg2[%c32_15, %c0_16] : memref<128x128xf32, #tpu.memory_space<vmem>>, vector<32x128xf32>
    %26 = arith.addf %24, %25 : vector<32x128xf32>
    %c64 = arith.constant 64 : index
    %c0_17 = arith.constant 0 : index
    %27 = vector.load %arg4[%c64, %c0_17] : memref<96x32xf32, #tpu.memory_space<vmem>>, vector<16x32xf32>
    %cst_18 = arith.constant dense<0.000000e+00> : vector<16x128xf32>
    %28 = tpu.matmul %27, %26, %cst_18 {dimension_numbers = #tpu.dot_dimension_numbers<[1], [0], [0], [1], [0, 0, 1, 1], [], []>} : vector<16x32xf32>, vector<32x128xf32>, vector<16x128xf32> -> vector<16x128xf32>
    %c80 = arith.constant 80 : index
    %c0_19 = arith.constant 0 : index
    %29 = vector.load %arg4[%c80, %c0_19] : memref<96x32xf32, #tpu.memory_space<vmem>>, vector<16x32xf32>
    %cst_20 = arith.constant dense<0.000000e+00> : vector<16x128xf32>
    %30 = tpu.matmul %29, %26, %cst_20 {dimension_numbers = #tpu.dot_dimension_numbers<[1], [0], [0], [1], [0, 0, 1, 1], [], []>} : vector<16x32xf32>, vector<32x128xf32>, vector<16x128xf32> -> vector<16x128xf32>
    %31 = arith.maximumf %28, %30 : vector<16x128xf32>
    %c0_21 = arith.constant 0 : index
    %c0_22 = arith.constant 0 : index
    %32 = vector.load %arg3[%c0_21, %c0_22] : memref<384x64xf32, #tpu.memory_space<vmem>>, vector<128x64xf32>
    %cst_23 = arith.constant dense<0.000000e+00> : vector<16x64xf32>
    %33 = tpu.matmul %31, %32, %cst_23 {dimension_numbers = #tpu.dot_dimension_numbers<[1], [0], [0], [1], [0, 0, 1, 1], [], []>} : vector<16x128xf32>, vector<128x64xf32>, vector<16x64xf32> -> vector<16x64xf32>
    %c128 = arith.constant 128 : index
    %c0_24 = arith.constant 0 : index
    %34 = vector.load %arg3[%c128, %c0_24] : memref<384x64xf32, #tpu.memory_space<vmem>>, vector<128x64xf32>
    %cst_25 = arith.constant dense<0.000000e+00> : vector<16x64xf32>
    %35 = tpu.matmul %31, %34, %cst_25 {dimension_numbers = #tpu.dot_dimension_numbers<[1], [0], [0], [1], [0, 0, 1, 1], [], []>} : vector<16x128xf32>, vector<128x64xf32>, vector<16x64xf32> -> vector<16x64xf32>
    %36 = arith.maximumf %33, %35 : vector<16x64xf32>
    %c0_26 = arith.constant 0 : index
    %c0_27 = arith.constant 0 : index
    %37 = vector.load %arg5[%c0_26, %c0_27] : memref<336x16xf32, #tpu.memory_space<vmem>>, vector<128x16xf32>
    %cst_28 = arith.constant dense<0.000000e+00> : vector<128x64xf32>
    %38 = tpu.matmul %37, %36, %cst_28 {dimension_numbers = #tpu.dot_dimension_numbers<[1], [0], [0], [1], [0, 0, 1, 1], [], []>} : vector<128x16xf32>, vector<16x64xf32>, vector<128x64xf32> -> vector<128x64xf32>
    %c256 = arith.constant 256 : index
    %c0_29 = arith.constant 0 : index
    %39 = vector.load %arg3[%c256, %c0_29] : memref<384x64xf32, #tpu.memory_space<vmem>>, vector<128x64xf32>
    %40 = arith.mulf %38, %39 : vector<128x64xf32>
    %c112 = arith.constant 112 : index
    %c0_30 = arith.constant 0 : index
    %41 = vector.load %arg2[%c112, %c0_30] : memref<128x128xf32, #tpu.memory_space<vmem>>, vector<16x128xf32>
    %cst_31 = arith.constant dense<0.000000e+00> : vector<16x64xf32>
    %42 = tpu.matmul %41, %40, %cst_31 {dimension_numbers = #tpu.dot_dimension_numbers<[1], [0], [0], [1], [0, 0, 1, 1], [], []>} : vector<16x128xf32>, vector<128x64xf32>, vector<16x64xf32> -> vector<16x64xf32>
    %c256_32 = arith.constant 256 : index
    %c0_33 = arith.constant 0 : index
    %43 = vector.load %arg5[%c256_32, %c0_33] : memref<336x16xf32, #tpu.memory_space<vmem>>, vector<64x16xf32>
    %cst_34 = arith.constant dense<0.000000e+00> : vector<16x16xf32>
    %44 = tpu.matmul %42, %43, %cst_34 {dimension_numbers = #tpu.dot_dimension_numbers<[1], [0], [0], [1], [0, 0, 1, 1], [], []>} : vector<16x64xf32>, vector<64x16xf32>, vector<16x16xf32> -> vector<16x16xf32>
    %cst_35 = arith.constant 0.000000e+00 : f32
    %45 = vector.broadcast %cst_35 : f32 to vector<16x16xf32>
    %46 = arith.maximumf %44, %45 : vector<16x16xf32>
    %c128_36 = arith.constant 128 : index
    %c0_37 = arith.constant 0 : index
    %47 = vector.load %arg5[%c128_36, %c0_37] : memref<336x16xf32, #tpu.memory_space<vmem>>, vector<128x16xf32>
    %cst_38 = arith.constant dense<0.000000e+00> : vector<128x16xf32>
    %48 = tpu.matmul %47, %46, %cst_38 {dimension_numbers = #tpu.dot_dimension_numbers<[1], [0], [0], [1], [0, 0, 1, 1], [], []>} : vector<128x16xf32>, vector<16x16xf32>, vector<128x16xf32> -> vector<128x16xf32>
    %49 = arith.negf %48 : vector<128x16xf32>
    %50 = math.exp %49 : vector<128x16xf32>
    %cst_39 = arith.constant 1.000000e+00 : f32
    %51 = vector.broadcast %cst_39 : f32 to vector<128x16xf32>
    %52 = arith.addf %51, %50 : vector<128x16xf32>
    %53 = arith.divf %51, %52 : vector<128x16xf32>
    %c64_40 = arith.constant 64 : index
    %c0_41 = arith.constant 0 : index
    %54 = vector.load %arg2[%c64_40, %c0_41] : memref<128x128xf32, #tpu.memory_space<vmem>>, vector<32x128xf32>
    %cst_42 = arith.constant dense<0.000000e+00> : vector<32x16xf32>
    %55 = tpu.matmul %54, %53, %cst_42 {dimension_numbers = #tpu.dot_dimension_numbers<[1], [0], [0], [1], [0, 0, 1, 1], [], []>} : vector<32x128xf32>, vector<128x16xf32>, vector<32x16xf32> -> vector<32x16xf32>
    %c320 = arith.constant 320 : index
    %c0_43 = arith.constant 0 : index
    %56 = vector.load %arg5[%c320, %c0_43] : memref<336x16xf32, #tpu.memory_space<vmem>>, vector<16x16xf32>
    %cst_44 = arith.constant dense<0.000000e+00> : vector<32x16xf32>
    %57 = tpu.matmul %55, %56, %cst_44 {dimension_numbers = #tpu.dot_dimension_numbers<[1], [0], [0], [1], [0, 0, 1, 1], [], []>} : vector<32x16xf32>, vector<16x16xf32>, vector<32x16xf32> -> vector<32x16xf32>
    %cst_45 = arith.constant 0.000000e+00 : f32
    %58 = vector.broadcast %cst_45 : f32 to vector<32x16xf32>
    %59 = arith.maximumf %57, %58 : vector<32x16xf32>
    %c96 = arith.constant 96 : index
    %c0_46 = arith.constant 0 : index
    %60 = vector.load %arg2[%c96, %c0_46] : memref<128x128xf32, #tpu.memory_space<vmem>>, vector<16x128xf32>
    %cst_47 = arith.constant dense<0.000000e+00> : vector<32x128xf32>
    %61 = tpu.matmul %59, %60, %cst_47 {dimension_numbers = #tpu.dot_dimension_numbers<[1], [0], [0], [1], [0, 0, 1, 1], [], []>} : vector<32x16xf32>, vector<16x128xf32>, vector<32x128xf32> -> vector<32x128xf32>
    %62 = arith.negf %61 : vector<32x128xf32>
    %63 = math.exp %62 : vector<32x128xf32>
    %cst_48 = arith.constant 1.000000e+00 : f32
    %64 = vector.broadcast %cst_48 : f32 to vector<32x128xf32>
    %65 = arith.addf %64, %63 : vector<32x128xf32>
    %66 = arith.divf %64, %65 : vector<32x128xf32>
    %67 = arith.mulf %26, %66 : vector<32x128xf32>
    %68 = math.tanh %67 : vector<32x128xf32>
    %69 = arith.mulf %67, %68 : vector<32x128xf32>
    %70 = arith.addf %0, %69 : vector<32x128xf32>
    %c0_49 = arith.constant 0 : index
    %c0_50 = arith.constant 0 : index
    %71 = vector.load %arg6[%c0_49, %c0_50] : memref<32x128xf32, #tpu.memory_space<vmem>>, vector<32x128xf32>
    tpu.vector_store %arg6[%c0_49, %c0_50], %70 {strides = array<i32>} : memref<32x128xf32, #tpu.memory_space<vmem>>, vector<32x128xf32>,
    return
  }
}

</mosaic_0001>

<bundles_post_ra>
// kernel: _sce_forward_jit.1
= control target key start
LH: loop header
LB: loop body
LE: loop exit
PB: predicated region body
PF: predicated region fallthrough
CT: control target
= control target key end

     0   :  { %v3070_v3 = vmov 0.0   ;;  %vm257_vm0 = vcmask 261120   ;;  %vm1248_vm1 = vcmask 130048   ;;  %vm1559_vm2 = vcmask 523264   ;;  %s3930_s1 = inlined_call_operand.vmem [shape: f32[128,768], index: 1, kind: input, shape index: {}]   ;;  %s3931_s0 = inlined_call_operand.vmem [shape: f32[32,128], index: 0, kind: input, shape index: {}]   ;;  %s3932_s4 = inlined_call_operand.vmem [shape: f32[96,32], index: 4, kind: input, shape index: {}]   ;;  %s3933_s2 = inlined_call_operand.vmem [shape: f32[128,128], index: 2, kind: input, shape index: {}]   ;;  %s3934_s3 = inlined_call_operand.vmem [shape: f32[384,64], index: 3, kind: input, shape index: {}]   ;;  %s3935_s5 = inlined_call_operand.vmem [shape: f32[336,16], index: 5, kind: input, shape index: {}]   ;;  %s3936_s6 = inlined_call_operand.vmem [shape: f32[32,128], index: 6, kind: output, shape index: {}]  }
   0x1   :  { %v81_v0 = vld [vmem:[%s3930_s1 + $0x2d8] sm:$0xff]  ;;  %v80_v1 = vld [vmem:[%s3930_s1 + $0x2d0] sm:$0xff]  ;;  %v78_v2 = vld [vmem:[%s3930_s1 + $0x2a8] sm:$0xff]  ;;  %147 = vmatprep.mubr.f32.mxu0 %v3070_v3 }
   0x2   :  { %83 = vmatprep.subr.mxu0 %v81_v0  ;;  %v77_v4 = vld [vmem:[%s3930_s1 + $0x2a0] sm:$0xff]  ;;  %v75_v5 = vld [vmem:[%s3930_s1 + $0x278] sm:$0xff]  ;;  %v74_v6 = vld [vmem:[%s3930_s1 + $0x270] sm:$0xff] }
   0x3   :  { %84 = vmatpush1.msra.mxu0 %v80_v1  ;;  %v72_v7 = vld [vmem:[%s3930_s1 + $0x248] sm:$0xff]  ;;  %v71_v8 = vld [vmem:[%s3930_s1 + $0x240] sm:$0xff]  ;;  %v69_v10 = vld [vmem:[%s3930_s1 + $0x218] sm:$0xff] }
   0x4   :  { %85 = vmatprep.subr.mxu0 %v78_v2  ;;  %v82_v9 = vld [vmem:[%s3930_s1 + $0x2e0] sm:$0xff]  ;;  %v79_v11 = vld [vmem:[%s3930_s1 + $0x2b0] sm:$0xff]  ;;  %v66_v14 = vld [vmem:[%s3930_s1 + $0x1e8] sm:$0xff] }
   0x5   :  { %86 = vmatpush1.msra.mxu0 %v77_v4  ;;  %2585 = vmatprep.subr.mxu1 %v82_v9  ;;  %v68_v12 = vld [vmem:[%s3930_s1 + $0x210] sm:$0xff]  ;;  %v76_v13 = vld [vmem:[%s3930_s1 + $0x280] sm:$0xff]  ;;  %v63_v17 = vld [vmem:[%s3930_s1 + $0x1b8] sm:$0xff] }
   0x6   :  { %87 = vmatprep.subr.mxu0 %v75_v5  ;;  %2586 = vmatpush3.msra.mxu1 %v82_v9  ;;  %v65_v15 = vld [vmem:[%s3930_s1 + $0x1e0] sm:$0xff]  ;;  %v73_v16 = vld [vmem:[%s3930_s1 + $0x250] sm:$0xff]  ;;  %v60_v20 = vld [vmem:[%s3930_s1 + $0x188] sm:$0xff] }
   0x7   :  { %88 = vmatpush1.msra.mxu0 %v74_v6  ;;  %2587 = vmatprep.subr.mxu1 %v79_v11  ;;  %v62_v18 = vld [vmem:[%s3930_s1 + $0x1b0] sm:$0xff]  ;;  %v70_v19 = vld [vmem:[%s3930_s1 + $0x220] sm:$0xff]  ;;  %v57_v23 = vld [vmem:[%s3930_s1 + $0x158] sm:$0xff] }
   0x8   :  { %89 = vmatprep.subr.mxu0 %v72_v7  ;;  %2588 = vmatpush3.msra.mxu1 %v79_v11  ;;  %v59_v21 = vld [vmem:[%s3930_s1 + $0x180] sm:$0xff]  ;;  %v67_v22 = vld [vmem:[%s3930_s1 + $0x1f0] sm:$0xff]  ;;  %v54_v26 = vld [vmem:[%s3930_s1 + $0x128] sm:$0xff] }
   0x9   :  { %90 = vmatpush1.msra.mxu0 %v71_v8  ;;  %2589 = vmatprep.subr.mxu1 %v76_v13  ;;  %v56_v24 = vld [vmem:[%s3930_s1 + $0x150] sm:$0xff]  ;;  %v64_v25 = vld [vmem:[%s3930_s1 + $0x1c0] sm:$0xff]  ;;  %v51_v29 = vld [vmem:[%s3930_s1 + $0xf8] sm:$0xff] }
   0xa   :  { %91 = vmatprep.subr.mxu0 %v69_v10  ;;  %2590 = vmatpush3.msra.mxu1 %v76_v13  ;;  %v53_v27 = vld [vmem:[%s3930_s1 + $0x120] sm:$0xff]  ;;  %v61_v28 = vld [vmem:[%s3930_s1 + $0x190] sm:$0xff]  ;;  %v48_v32 = vld [vmem:[%s3930_s1 + $0xc8] sm:$0xff] }
   0xb   :  { %92 = vmatpush1.msra.mxu0 %v68_v12  ;;  %2591 = vmatprep.subr.mxu1 %v73_v16  ;;  %v50_v30 = vld [vmem:[%s3930_s1 + $0xf0] sm:$0xff]  ;;  %v58_v31 = vld [vmem:[%s3930_s1 + $0x160] sm:$0xff]  ;;  %v45_v35 = vld [vmem:[%s3930_s1 + $0x98] sm:$0xff] }
   0xc   :  { %93 = vmatprep.subr.mxu0 %v66_v14  ;;  %2592 = vmatpush3.msra.mxu1 %v73_v16  ;;  %v47_v33 = vld [vmem:[%s3930_s1 + $0xc0] sm:$0xff]  ;;  %v55_v34 = vld [vmem:[%s3930_s1 + $0x130] sm:$0xff]  ;;  %v42_v38 = vld [vmem:[%s3930_s1 + $0x68] sm:$0xff] }
   0xd   :  { %94 = vmatpush1.msra.mxu0 %v65_v15  ;;  %2593 = vmatprep.subr.mxu1 %v70_v19  ;;  %v44_v36 = vld [vmem:[%s3930_s1 + $0x90] sm:$0xff]  ;;  %v52_v37 = vld [vmem:[%s3930_s1 + $0x100] sm:$0xff]  ;;  %v39_v41 = vld [vmem:[%s3930_s1 + $0x38] sm:$0xff] }
   0xe   :  { %95 = vmatprep.subr.mxu0 %v63_v17  ;;  %2594 = vmatpush3.msra.mxu1 %v70_v19  ;;  %v41_v39 = vld [vmem:[%s3930_s1 + $0x60] sm:$0xff]  ;;  %v49_v40 = vld [vmem:[%s3930_s1 + $0xd0] sm:$0xff]  ;;  %v36_v44 = vld [vmem:[%s3930_s1 + $0x8] sm:$0xff] }
   0xf   :  { %96 = vmatpush1.msra.mxu0 %v62_v18  ;;  %2595 = vmatprep.subr.mxu1 %v67_v22  ;;  %v38_v42 = vld [vmem:[%s3930_s1 + $0x30] sm:$0xff]  ;;  %v46_v43 = vld [vmem:[%s3930_s1 + $0xa0] sm:$0xff]  ;;  %v24_v50 = vld [vmem:[%s3931_s0 + $0x8] sm:$0xff] }
  0x10   :  { %97 = vmatprep.subr.mxu0 %v60_v20  ;;  %2596 = vmatpush3.msra.mxu1 %v67_v22  ;;  %v35_v45 = vld [vmem:[%s3930_s1] sm:$0xff]  ;;  %v43_v46 = vld [vmem:[%s3930_s1 + $0x70] sm:$0xff]  ;;  %v26_v52 = vld [vmem:[%s3931_s0 + $0x18] sm:$0xff] }
  0x11   :  { %98 = vmatpush1.msra.mxu0 %v59_v21  ;;  %2597 = vmatprep.subr.mxu1 %v64_v25  ;;  %v23_v47 = vld [vmem:[%s3931_s0] sm:$0xff]  ;;  %v37_v49 = vld [vmem:[%s3930_s1 + $0x10] sm:$0xff]  ;;  %v519_v54 = vld [vmem:[%s3930_s1 + $0x2f8] sm:$0xff] }
  0x12   :  { %99 = vmatprep.subr.mxu0 %v57_v23  ;;  %2598 = vmatpush3.msra.mxu1 %v64_v25  ;;  %v40_v48 = vld [vmem:[%s3930_s1 + $0x40] sm:$0xff]  ;;  %v25_v51 = vld [vmem:[%s3931_s0 + $0x10] sm:$0xff]  ;;  %v516_v55 = vld [vmem:[%s3930_s1 + $0x2c8] sm:$0xff] }
  0x13   :  { %100 = vmatpush1.msra.mxu0 %v56_v24  ;;  %2599 = vmatprep.subr.mxu1 %v61_v28  ;;  %v3269_v53 = vld [vmem:[%s3932_s4] sm:$0xff]  ;;  %v513_v56 = vld [vmem:[%s3930_s1 + $0x298] sm:$0xff]  ;;  %v510_v57 = vld [vmem:[%s3930_s1 + $0x268] sm:$0xff] }
  0x14   :  { %101 = vmatprep.subr.mxu0 %v54_v26  ;;  %2600 = vmatpush3.msra.mxu1 %v61_v28  ;;  %v507_v58 = vld [vmem:[%s3930_s1 + $0x238] sm:$0xff]  ;;  %v504_v59 = vld [vmem:[%s3930_s1 + $0x208] sm:$0xff]  ;;  %v3308_v9 = vld [vmem:[%s3932_s4 + $0x10] sm:$0xff] }
  0x15   :  { %102 = vmatpush1.msra.mxu0 %v53_v27  ;;  %2601 = vmatprep.subr.mxu1 %v58_v31  ;;  %v501_v60 = vld [vmem:[%s3930_s1 + $0x1d8] sm:$0xff]  ;;  %v3303_v8 = vld [vmem:[%s3932_s4 + $0x8] sm:$0xff]  ;;  %v3322_v12 = vld [vmem:[%s3932_s4 + $0x20] sm:$0xff] }
  0x16   :  { %103 = vmatprep.subr.mxu0 %v51_v29  ;;  %2602 = vmatpush3.msra.mxu1 %v58_v31  ;;  %v3317_v11 = vld [vmem:[%s3932_s4 + $0x18] sm:$0xff]  ;;  %v3331_v13 = vld [vmem:[%s3932_s4 + $0x28] sm:$0xff]  ;;  %v518_v14 = vld [vmem:[%s3930_s1 + $0x2f0] sm:$0xff] }
  0x17   :  { %104 = vmatpush1.msra.mxu0 %v50_v30  ;;  %2603 = vmatprep.subr.mxu1 %v55_v34  ;;  %v3339_v15 = vld [vmem:[%s3932_s4 + $0x30] sm:$0xff]  ;;  %v517_v16 = vld [vmem:[%s3930_s1 + $0x2e8] sm:$0xff]  ;;  %v515_v17 = vld [vmem:[%s3930_s1 + $0x2c0] sm:$0xff] }
  0x18   :  { %105 = vmatprep.subr.mxu0 %v48_v32  ;;  %2604 = vmatpush3.msra.mxu1 %v55_v34  ;;  %v514_v18 = vld [vmem:[%s3930_s1 + $0x2b8] sm:$0xff]  ;;  %v512_v20 = vld [vmem:[%s3930_s1 + $0x290] sm:$0xff]  ;;  %v511_v21 = vld [vmem:[%s3930_s1 + $0x288] sm:$0xff] }
  0x19   :  { %106 = vmatpush1.msra.mxu0 %v47_v33  ;;  %2605 = vmatprep.subr.mxu1 %v52_v37  ;;  %v3357_v19 = vld [vmem:[%s3932_s4 + $0x38] sm:$0xff]  ;;  %v509_v22 = vld [vmem:[%s3930_s1 + $0x260] sm:$0xff]  ;;  %v506_v24 = vld [vmem:[%s3930_s1 + $0x230] sm:$0xff] }
  0x1a   :  { %107 = vmatprep.subr.mxu0 %v45_v35  ;;  %2606 = vmatpush3.msra.mxu1 %v52_v37  ;;  %v508_v23 = vld [vmem:[%s3930_s1 + $0x258] sm:$0xff]  ;;  %v505_v25 = vld [vmem:[%s3930_s1 + $0x228] sm:$0xff]  ;;  %v503_v26 = vld [vmem:[%s3930_s1 + $0x200] sm:$0xff] }
  0x1b   :  { %108 = vmatpush1.msra.mxu0 %v44_v36  ;;  %2607 = vmatprep.subr.mxu1 %v49_v40  ;;  %v502_v27 = vld [vmem:[%s3930_s1 + $0x1f8] sm:$0xff]  ;;  %v500_v28 = vld [vmem:[%s3930_s1 + $0x1d0] sm:$0xff]  ;;  %v499_v29 = vld [vmem:[%s3930_s1 + $0x1c8] sm:$0xff] }
  0x1c   :  { %109 = vmatprep.subr.mxu0 %v42_v38  ;;  %2608 = vmatpush3.msra.mxu1 %v49_v40  ;;  %v497_v30 = vld [vmem:[%s3930_s1 + $0x1a0] sm:$0xff]  ;;  %v496_v31 = vld [vmem:[%s3930_s1 + $0x198] sm:$0xff]  ;;  %v498_v32 = vld [vmem:[%s3930_s1 + $0x1a8] sm:$0xff] }
  0x1d   :  { %110 = vmatpush1.msra.mxu0 %v41_v39  ;;  %2609 = vmatprep.subr.mxu1 %v46_v43  ;;  %v494_v33 = vld [vmem:[%s3930_s1 + $0x170] sm:$0xff]  ;;  %v493_v34 = vld [vmem:[%s3930_s1 + $0x168] sm:$0xff]  ;;  %v495_v35 = vld [vmem:[%s3930_s1 + $0x178] sm:$0xff] }
  0x1e   :  { %111 = vmatprep.subr.mxu0 %v39_v41  ;;  %2610 = vmatpush3.msra.mxu1 %v46_v43  ;;  %v491_v36 = vld [vmem:[%s3930_s1 + $0x140] sm:$0xff]  ;;  %v490_v37 = vld [vmem:[%s3930_s1 + $0x138] sm:$0xff]  ;;  %v492_v38 = vld [vmem:[%s3930_s1 + $0x148] sm:$0xff] }
  0x1f   :  { %112 = vmatpush1.msra.mxu0 %v38_v42  ;;  %2611 = vmatprep.subr.mxu1 %v43_v46  ;;  %v488_v39 = vld [vmem:[%s3930_s1 + $0x110] sm:$0xff]  ;;  %v487_v40 = vld [vmem:[%s3930_s1 + $0x108] sm:$0xff]  ;;  %v489_v41 = vld [vmem:[%s3930_s1 + $0x118] sm:$0xff] }
  0x20   :  { %113 = vmatprep.subr.mxu0 %v36_v44  ;;  %2612 = vmatpush3.msra.mxu1 %v43_v46  ;;  %v485_v42 = vld [vmem:[%s3930_s1 + $0xe0] sm:$0xff]  ;;  %v484_v43 = vld [vmem:[%s3930_s1 + $0xd8] sm:$0xff]  ;;  %v486_v44 = vld [vmem:[%s3930_s1 + $0xe8] sm:$0xff] }
  0x21   :  { %114 = vmatpush1.msra.mxu0 %v35_v45  ;;  %2613 = vmatprep.subr.mxu1 %v40_v48  ;;  %v482_v45 = vld [vmem:[%s3930_s1 + $0xb0] sm:$0xff]  ;;  %v481_v46 = vld [vmem:[%s3930_s1 + $0xa8] sm:$0xff] }
  0x22   :  { %148 = vmatmul.mubr.f32.vlgmr.msra.gmra.mxu0 %v23_v47  ;;  %2614 = vmatpush3.msra.mxu1 %v40_v48  ;;  %v479_v48 = vld [vmem:[%s3930_s1 + $0x80] sm:$0xff] }
  0x23   :  { %153 = vmatprep.mubr.f32.mxu0 %v3070_v3  ;;  %2617 = vmatprep.mubr.f32.mxu1 %v23_v47  ;;  %v483_v47 = vld [vmem:[%s3930_s1 + $0xb8] sm:$0xff] }
  0x24   :  { %2615 = vmatprep.subr.mxu1 %v37_v49  ;;  %2651 = vmatprep.subr.mxu0 %v519_v54 }
  0x25   :  { %2616 = vmatpush3.msra.mxu1 %v37_v49  ;;  %2652 = vmatpush3.msra.mxu0 %v519_v54  ;;  %v478_v49 = vld [vmem:[%s3930_s1 + $0x78] sm:$0xff] }
  0x26   :  { %154 = vmatmul.mubr.f32.gmra.mxu0 %v24_v50  ;;  %2618 = vmatmul.mubr.f32.vlgmr.msra.gmra.mxu1 %v24_v50  ;;  %v480_v50 = vld [vmem:[%s3930_s1 + $0x88] sm:$0xff]  ;;  %v477_v54 = vld [vmem:[%s3930_s1 + $0x58] sm:$0xff] }
  0x27   :  { %159 = vmatprep.mubr.f32.mxu0 %v3070_v3  ;;  %2620 = vmatprep.mubr.f32.mxu1 %v25_v51 }
  0x28   :  { %2653 = vmatprep.subr.mxu0 %v516_v55 }
  0x29   :  { %2654 = vmatpush3.msra.mxu0 %v516_v55  ;;  %v473_v55 = vld [vmem:[%s3930_s1 + $0x20] sm:$0xff] }
  0x2a   :  { %160 = vmatmul.mubr.f32.gmra.mxu0 %v25_v51  ;;  %2621 = vmatmul.mubr.f32.gmra.mxu1 %v26_v52  ;;  %v476_v51 = vld [vmem:[%s3930_s1 + $0x50] sm:$0xff] }
  0x2b   :  { %165 = vmatprep.mubr.f32.mxu0 %v3070_v3  ;;  %2631 = vmatprep.mubr.msk.f32.mxu1 %vm257_vm0, %v3269_v53 }
  0x2c   :  { %2655 = vmatprep.subr.mxu0 %v513_v56 }
  0x2d   :  { %2656 = vmatpush3.msra.mxu0 %v513_v56  ;;  %v472_v56 = vld [vmem:[%s3930_s1 + $0x18] sm:$0xff] }
  0x2e   :  { %166 = vmatmul.mubr.f32.gmra.mxu0 %v26_v52  ;;  %2657 = vmatprep.subr.mxu0 %v510_v57  ;;  %v475_v52 = vld [vmem:[%s3930_s1 + $0x48] sm:$0xff] }
  0x2f   :  { %2658 = vmatpush3.msra.mxu0 %v510_v57  ;;  %v474_v57 = vld [vmem:[%s3930_s1 + $0x28] sm:$0xff] }
  0x30   :  { %2659 = vmatprep.subr.mxu0 %v507_v58 }
  0x31   :  { %2660 = vmatpush3.msra.mxu0 %v507_v58 }
  0x32   :  { %2661 = vmatprep.subr.mxu0 %v504_v59 }
  0x33   :  { %2662 = vmatpush3.msra.mxu0 %v504_v59 }
  0x34   :  { %2663 = vmatprep.subr.mxu0 %v501_v60 }
  0x35   :  { %2664 = vmatpush3.msra.mxu0 %v501_v60 }
  0x36   :  { %2665 = vmatprep.subr.mxu0 %v498_v32 }
  0x37   :  { %2666 = vmatpush3.msra.mxu0 %v498_v32 }
  0x38   :  { %2667 = vmatprep.subr.mxu0 %v495_v35 }
  0x39   :  { %2668 = vmatpush3.msra.mxu0 %v495_v35 }
  0x3a   :  { %2669 = vmatprep.subr.mxu0 %v492_v38 }
  0x3b   :  { %2670 = vmatpush3.msra.mxu0 %v492_v38 }
  0x3c   :  { %2671 = vmatprep.subr.mxu0 %v489_v41 }
  0x3d   :  { %2672 = vmatpush3.msra.mxu0 %v489_v41 }
  0x3e   :  { %2673 = vmatprep.subr.mxu0 %v486_v44 }
  0x3f   :  { %2674 = vmatpush3.msra.mxu0 %v486_v44  ;;  %v875_v44 = vld [vmem:[%s3933_s2 + $0x38] sm:$0xff] }
  0x40   :  { %2675 = vmatprep.subr.mxu0 %v483_v47 }
  0x41   :  { %2676 = vmatpush3.msra.mxu0 %v483_v47 }
  0x42   :  { %2677 = vmatprep.subr.mxu0 %v480_v50 }
  0x43   :  { %2678 = vmatpush3.msra.mxu0 %v480_v50  ;;  %v874_v50 = vld [vmem:[%s3933_s2 + $0x30] sm:$0xff] }
  0x44   :  { %2679 = vmatprep.subr.mxu0 %v477_v54 }
  0x45   :  { %2680 = vmatpush3.msra.mxu0 %v477_v54 }
  0x46   :  { %2681 = vmatprep.subr.mxu0 %v474_v57 }
  0x47   :  { %2682 = vmatpush3.msra.mxu0 %v474_v57 }
  0xe2   :  { %v149_v61 = vpop.f32.mrf.mxu0 }
  0xe4   :  { %v3294_v62 = vpop.f32.mrf.mxu0 }
  0xe6   :  { %v155_v63 = vpop.f32.mrf.mxu0  ;;  %v2619_v4 = vpop.f32.mrf.mxu1 }
  0xe8   :  { %v3296_v0 = vpop.f32.mrf.mxu0  ;;  %v238_v6 = vpop.f32.mrf.mxu1 }
  0xea   :  { %v161_v1 = vpop.f32.mrf.mxu0  ;;  %v2622_v7 = vpop.f32.mrf.mxu1 }
  0xec   :  { %v3298_v2 = vpop.f32.mrf.mxu0  ;;  %v248_v10 = vpop.f32.mrf.mxu1 }
  0xee   :  { %v167_v5 = vpop.f32.mrf.mxu0 }
  0xef   :  { %2623 = vmatprep.subr.mxu1 %v167_v5 }
  0xf0   :  { %2624 = vmatpush3.msra.mxu1 %v167_v5 }
  0xf1   :  { %2625 = vmatprep.subr.mxu1 %v161_v1 }
  0xf2   :  { %2626 = vmatpush3.msra.mxu1 %v161_v1 }
  0xf3   :  { %2627 = vmatprep.subr.mxu1 %v155_v63 }
  0xf4   :  { %2628 = vmatpush3.msra.mxu1 %v155_v63 }
  0xf5   :  { %2629 = vmatprep.subr.mxu1 %v149_v61 }
  0xf6   :  { %2630 = vmatpush3.msra.mxu1 %v149_v61 }
  0xf7   :  { %2632 = vmatmul.mubr.msk.f32.vlgmr.msra.gmra.mxu1 %vm257_vm0, %v3303_v8  ;;  %2637 = vmatprep.subr.mxu1 %v2622_v7 }
  0xf8   :  { %2638 = vmatpush3.msra.mxu1 %v2622_v7  ;;  %2634 = vmatprep.mubr.msk.f32.mxu1 %vm257_vm0, %v3308_v9  ;;  %v169_v7 = vpop.f32.mrf.mxu0 }
  0xf9   :  { %2639 = vmatprep.subr.mxu1 %v248_v10 }
  0xfa   :  { %2640 = vmatpush3.msra.mxu1 %v248_v10 }
  0xfb   :  { %2635 = vmatmul.mubr.msk.f32.gmra.mxu1 %vm257_vm0, %v3317_v11  ;;  %2641 = vmatprep.subr.mxu1 %v2619_v4 }
  0xfc   :  { %2642 = vmatpush3.msra.mxu1 %v2619_v4  ;;  %2645 = vmatprep.mubr.msk.f32.mxu1 %vm257_vm0, %v3322_v12 }
  0xfd   :  { %2643 = vmatprep.subr.mxu1 %v238_v6 }
  0xfe   :  { %2644 = vmatpush3.msra.mxu1 %v238_v6  ;;  %v461_v6 = vld [vmem:[%s3933_s2 + $0x8] sm:$0xff] }
  0xff   :  { %2646 = vmatmul.mubr.msk.f32.vlgmr.msra.gmra.mxu1 %vm257_vm0, %v3331_v13  ;;  %520 = vmatprep.subr.mxu1 %v518_v14  ;;  %v460_v14 = vld [vmem:[%s3933_s2] sm:$0xff] }
 0x100   :  { %2648 = vmatprep.mubr.msk.f32.mxu1 %vm257_vm0, %v3339_v15  ;;  %521 = vmatpush1.msra.mxu1 %v517_v16 }
 0x101   :  { %522 = vmatprep.subr.mxu1 %v515_v17 }
 0x102   :  { %523 = vmatpush1.msra.mxu1 %v514_v18 }
 0x103   :  { %2649 = vmatmul.mubr.msk.f32.gmra.mxu1 %vm257_vm0, %v3357_v19  ;;  %524 = vmatprep.subr.mxu1 %v512_v20 }
 0x104   :  { %525 = vmatpush1.msra.mxu1 %v511_v21  ;;  %584 = vmatprep.mubr.f32.mxu1 %v3070_v3 }
 0x105   :  { %526 = vmatprep.subr.mxu1 %v509_v22 }
 0x106   :  { %527 = vmatpush1.msra.mxu1 %v508_v23 }
 0x107   :  { %528 = vmatprep.subr.mxu1 %v506_v24  ;;  %v462_v24 = vld [vmem:[%s3933_s2 + $0x10] sm:$0xff] }
 0x108   :  { %529 = vmatpush1.msra.mxu1 %v505_v25 }
 0x109   :  { %530 = vmatprep.subr.mxu1 %v503_v26 }
 0x10a   :  { %531 = vmatpush1.msra.mxu1 %v502_v27 }
 0x10b   :  { %532 = vmatprep.subr.mxu1 %v500_v28 }
 0x10c   :  { %533 = vmatpush1.msra.mxu1 %v499_v29 }
 0x10d   :  { %534 = vmatprep.subr.mxu1 %v497_v30 }
 0x10e   :  { %535 = vmatpush1.msra.mxu1 %v496_v31 }
 0x10f   :  { %536 = vmatprep.subr.mxu1 %v494_v33 }
 0x110   :  { %537 = vmatpush1.msra.mxu1 %v493_v34 }
 0x111   :  { %538 = vmatprep.subr.mxu1 %v491_v36 }
 0x112   :  { %539 = vmatpush1.msra.mxu1 %v490_v37 }
 0x113   :  { %540 = vmatprep.subr.mxu1 %v488_v39 }
 0x114   :  { %541 = vmatpush1.msra.mxu1 %v487_v40 }
 0x115   :  { %542 = vmatprep.subr.mxu1 %v485_v42 }
 0x116   :  { %543 = vmatpush1.msra.mxu1 %v484_v43 }
 0x117   :  { %544 = vmatprep.subr.mxu1 %v482_v45 }
 0x118   :  { %545 = vmatpush1.msra.mxu1 %v481_v46 }
 0x119   :  { %546 = vmatprep.subr.mxu1 %v479_v48 }
 0x11a   :  { %547 = vmatpush1.msra.mxu1 %v478_v49 }
 0x11b   :  { %548 = vmatprep.subr.mxu1 %v476_v51 }
 0x11c   :  { %549 = vmatpush1.msra.mxu1 %v475_v52 }
 0x11d   :  { %550 = vmatprep.subr.mxu1 %v473_v55  ;;  %v873_v55 = vld [vmem:[%s3933_s2 + $0x28] sm:$0xff] }
 0x11e   :  { %551 = vmatpush1.msra.mxu1 %v472_v56 }
 0x1b7   :  { %v2633_v58 = vpop.f32.mrf.mxu1 }
 0x1b8   :  { %v356_v63 = vadd.f32 %v2633_v58, %v3296_v0  ;;  %v872_v58 = vld [vmem:[%s3933_s2 + $0x20] sm:$0xff] }
 0x1b9   :  { %v336_v59 = vpop.f32.mrf.mxu1 }
 0x1ba   :  { %v355_v4 = vadd.f32 %v336_v59, %v3294_v62  ;;  %v463_v62 = vld [vmem:[%s3933_s2 + $0x18] sm:$0xff] }
 0x1bb   :  { %v2636_v60 = vpop.f32.mrf.mxu1 }
 0x1bc   :  { %v358_v16 = vadd.f32 %v2636_v60, %v169_v7  ;;  %v1061_v7 = vld [vmem:[%s3934_s3 + $0x68] sm:$0xff] }
 0x1bd   :  { %v346_v61 = vpop.f32.mrf.mxu1 }
 0x1be   :  { %v357_v0 = vadd.f32 %v346_v61, %v3298_v2  ;;  %v881_v61 = vld [vmem:[%s3932_s4 + $0x48] sm:$0xff] }
 0x1bf   :  { %v2647_v1 = vpop.f32.mrf.mxu1 }
 0x1c0   :  { %v457_v5 = vadd.f32 %v2647_v1, %v356_v63  ;;  %v964_v63 = vld [vmem:[%s3932_s4 + $0x58] sm:$0xff] }
 0x1c1   :  { %v437_v10 = vpop.f32.mrf.mxu1  ;;  %v1063_v1 = vld [vmem:[%s3934_s3 + $0x78] sm:$0xff] }
 0x1c2   :  { %v456_v17 = vadd.f32 %v437_v10, %v355_v4  ;;  %v465_v18 = vadd.f32 %v461_v6, %v457_v5  ;;  %v1154_v4 = vld [vmem:[%s3934_s3 + $0xf8] sm:$0xff]  ;;  %v1062_v5 = vld [vmem:[%s3934_s3 + $0x70] sm:$0xff]  ;;  %v1152_v10 = vld [vmem:[%s3934_s3 + $0xe8] sm:$0xff] }
 0x1c3   :  { %v2650_v20 = vpop.f32.mrf.mxu1  ;;  %v1153_v6 = vld [vmem:[%s3934_s3 + $0xf0] sm:$0xff] }
 0x1c4   :  { %v464_v21 = vadd.f32 %v460_v14, %v456_v17  ;;  %v459_v22 = vadd.f32 %v2650_v20, %v358_v16  ;;  %v469_v27 = vmax.f32 %v465_v18, 0.0  ;;  %v1060_v14 = vld [vmem:[%s3934_s3 + $0x60] sm:$0xff]  ;;  %v1059_v17 = vld [vmem:[%s3934_s3 + $0x58] sm:$0xff]  ;;  %v1058_v20 = vld [vmem:[%s3934_s3 + $0x50] sm:$0xff] }
 0x1c5   :  { %v447_v23 = vpop.f32.mrf.mxu1  ;;  %v1151_v16 = vld [vmem:[%s3934_s3 + $0xe0] sm:$0xff]  ;;  %v1150_v18 = vld [vmem:[%s3934_s3 + $0xd8] sm:$0xff] }
 0x1c6   :  { %v468_v25 = vmax.f32 %v464_v21, 0.0  ;;  %v458_v26 = vadd.f32 %v447_v23, %v357_v0  ;;  %v467_v28 = vadd.f32 %v463_v62, %v459_v22  ;;  %v1149_v0 = vld [vmem:[%s3934_s3 + $0xd0] sm:$0xff]  ;;  %v1057_v21 = vld [vmem:[%s3934_s3 + $0x48] sm:$0xff]  ;;  %v1056_v62 = vld [vmem:[%s3934_s3 + $0x40] sm:$0xff] }
 0x1c7   :  { %v1148_v22 = vld [vmem:[%s3934_s3 + $0xc8] sm:$0xff]  ;;  %v1147_v23 = vld [vmem:[%s3934_s3 + $0xc0] sm:$0xff] }
 0x1c8   :  { %v466_v29 = vadd.f32 %v462_v24, %v458_v26  ;;  %585 = vmatmul.mubr.f32.vlgmr.msra.gmra.mxu1 %v468_v25  ;;  %2683 = vmatprep.mubr.f32.mxu0 %v468_v25  ;;  %v471_v30 = vmax.f32 %v467_v28, 0.0  ;;  %v1055_v24 = vld [vmem:[%s3934_s3 + $0x38] sm:$0xff]  ;;  %v1054_v26 = vld [vmem:[%s3934_s3 + $0x30] sm:$0xff]  ;;  %v1053_v28 = vld [vmem:[%s3934_s3 + $0x28] sm:$0xff] }
 0x1c9   :  { %2684 = vmatmul.mubr.f32.vlgmr.msra.gmra.mxu0 %v469_v27  ;;  %590 = vmatprep.mubr.f32.mxu1 %v3070_v3  ;;  %v1146_v25 = vld [vmem:[%s3934_s3 + $0xb8] sm:$0xff] }
 0x1ca   :  { %v470_v2 = vmax.f32 %v466_v29, 0.0  ;;  %v1144_v29 = vld [vmem:[%s3934_s3 + $0xa8] sm:$0xff] }
 0x1cc   :  { %591 = vmatmul.mubr.f32.gmra.mxu1 %v469_v27  ;;  %2686 = vmatprep.mubr.f32.mxu0 %v470_v2  ;;  %v1145_v27 = vld [vmem:[%s3934_s3 + $0xb0] sm:$0xff] }
 0x1cd   :  { %2687 = vmatmul.mubr.f32.gmra.mxu0 %v471_v30  ;;  %596 = vmatprep.mubr.f32.mxu1 %v3070_v3 }
 0x1ce   :  { %2697 = vmatprep.mubr.msk.f32.mxu0 %vm257_vm0, %v3269_v53 }
 0x1d0   :  { %597 = vmatmul.mubr.f32.gmra.mxu1 %v470_v2  ;;  %v1052_v2 = vld [vmem:[%s3934_s3 + $0x20] sm:$0xff] }
 0x1d1   :  { %602 = vmatprep.mubr.f32.mxu1 %v3070_v3 }
 0x1d4   :  { %603 = vmatmul.mubr.f32.gmra.mxu1 %v471_v30  ;;  %v1143_v30 = vld [vmem:[%s3934_s3 + $0xa0] sm:$0xff] }
 0x1d5   :  { %2711 = vmatprep.mubr.msk.f32.mxu1 %vm257_vm0, %v3322_v12  ;;  %v880_v12 = vld [vmem:[%s3932_s4 + $0x40] sm:$0xff] }
 0x288   :  { %v586_v31 = vpop.f32.mrf.mxu1 }
 0x289   :  { %v2685_v32 = vpop.f32.mrf.mxu0 }
 0x28a   :  { %v588_v33 = vpop.f32.mrf.mxu1 }
 0x28b   :  { %v675_v34 = vpop.f32.mrf.mxu0 }
 0x28c   :  { %v592_v35 = vpop.f32.mrf.mxu1 }
 0x28d   :  { %v2688_v36 = vpop.f32.mrf.mxu0 }
 0x28e   :  { %v594_v37 = vpop.f32.mrf.mxu1  ;;  %2703 = vmatprep.subr.mxu1 %v2688_v36 }
 0x28f   :  { %v685_v38 = vpop.f32.mrf.mxu0  ;;  %2704 = vmatpush3.msra.mxu1 %v2688_v36  ;;  %v1140_v36 = vld [vmem:[%s3934_s3 + $0x88] sm:$0xff] }
 0x290   :  { %v598_v39 = vpop.f32.mrf.mxu1  ;;  %2705 = vmatprep.subr.mxu1 %v685_v38 }
 0x291   :  { %2706 = vmatpush3.msra.mxu1 %v685_v38  ;;  %v1139_v38 = vld [vmem:[%s3934_s3 + $0x80] sm:$0xff] }
 0x292   :  { %v600_v53 = vpop.f32.mrf.mxu1  ;;  %2707 = vmatprep.subr.mxu1 %v2685_v32 }
 0x293   :  { %2708 = vmatpush3.msra.mxu1 %v2685_v32  ;;  %v1142_v32 = vld [vmem:[%s3934_s3 + $0x98] sm:$0xff] }
 0x294   :  { %v604_v3 = vpop.f32.mrf.mxu1  ;;  %2709 = vmatprep.subr.mxu1 %v675_v34 }
 0x295   :  { %2689 = vmatprep.subr.mxu0 %v604_v3  ;;  %2710 = vmatpush3.msra.mxu1 %v675_v34  ;;  %v1141_v34 = vld [vmem:[%s3934_s3 + $0x90] sm:$0xff] }
 0x296   :  { %2690 = vmatpush3.msra.mxu0 %v604_v3  ;;  %2712 = vmatmul.mubr.msk.f32.vlgmr.msra.gmra.mxu1 %vm257_vm0, %v3331_v13  ;;  %v963_v13 = vld [vmem:[%s3932_s4 + $0x50] sm:$0xff] }
 0x297   :  { %2691 = vmatprep.subr.mxu0 %v598_v39  ;;  %2714 = vmatprep.mubr.msk.f32.mxu1 %vm257_vm0, %v3339_v15  ;;  %v606_v15 = vpop.f32.mrf.mxu1 }
 0x298   :  { %2692 = vmatpush3.msra.mxu0 %v598_v39 }
 0x299   :  { %2693 = vmatprep.subr.mxu0 %v592_v35 }
 0x29a   :  { %2694 = vmatpush3.msra.mxu0 %v592_v35  ;;  %2715 = vmatmul.mubr.msk.f32.gmra.mxu1 %vm257_vm0, %v3357_v19  ;;  %v1049_v35 = vld [vmem:[%s3934_s3 + $0x8] sm:$0xff] }
 0x29b   :  { %2695 = vmatprep.subr.mxu0 %v586_v31  ;;  %2736 = vmatprep.mubr.msk.f32.mxu1 %vm257_vm0, %v963_v13 }
 0x29c   :  { %2696 = vmatpush3.msra.mxu0 %v586_v31  ;;  %v1051_v31 = vld [vmem:[%s3934_s3 + $0x18] sm:$0xff] }
 0x29d   :  { %2698 = vmatmul.mubr.msk.f32.vlgmr.msra.gmra.mxu0 %vm257_vm0, %v3303_v8 }
 0x29e   :  { %2700 = vmatprep.mubr.msk.f32.mxu0 %vm257_vm0, %v3308_v9 }
 0x2a1   :  { %2701 = vmatmul.mubr.msk.f32.gmra.mxu0 %vm257_vm0, %v3317_v11 }
 0x2a2   :  { %2725 = vmatprep.mubr.msk.f32.mxu0 %vm257_vm0, %v880_v12 }
 0x356   :  { %v2713_v8 = vpop.f32.mrf.mxu1 }
 0x358   :  { %v849_v40 = vpop.f32.mrf.mxu1 }
 0x35a   :  { %v2716_v42 = vpop.f32.mrf.mxu1 }
 0x35c   :  { %v859_v49 = vpop.f32.mrf.mxu1 }
 0x35d   :  { %v2699_v19 = vpop.f32.mrf.mxu0 }
 0x35e   :  { %v780_v11 = vadd.f32 %v2699_v19, %v594_v37  ;;  %v1048_v37 = vld [vmem:[%s3934_s3] sm:$0xff] }
 0x35f   :  { %v760_v9 = vpop.f32.mrf.mxu0 }
 0x360   :  { %v779_v46 = vadd.f32 %v760_v9, %v588_v33  ;;  %v869_v51 = vadd.f32 %v2713_v8, %v780_v11  ;;  %v1050_v33 = vld [vmem:[%s3934_s3 + $0x10] sm:$0xff]  ;;  %v1232_v8 = vld [vmem:[%s3935_s5] sm:$0xff] }
 0x361   :  { %v2702_v41 = vpop.f32.mrf.mxu0 }
 0x362   :  { %v782_v43 = vadd.f32 %v2702_v41, %v606_v15  ;;  %v868_v56 = vadd.f32 %v849_v40, %v779_v46  ;;  %v3535_v59 = vadd.f32 %v873_v55, %v869_v51  ;;  %v1236_v46 = vld [vmem:[%s3935_s5 + $0x20] sm:$0xff]  ;;  %v1241_v51 = vld [vmem:[%s3935_s5 + $0x48] sm:$0xff]  ;;  %v1243_v55 = vld [vmem:[%s3935_s5 + $0x58] sm:$0xff] }
 0x363   :  { %v770_v45 = vpop.f32.mrf.mxu0 }
 0x364   :  { %v871_v47 = vadd.f32 %v2716_v42, %v782_v43  ;;  %v781_v48 = vadd.f32 %v770_v45, %v600_v53  ;;  %v3541_v60 = vadd.f32 %v872_v58, %v868_v56  ;;  %v1233_v43 = vld [vmem:[%s3935_s5 + $0x8] sm:$0xff]  ;;  %v1235_v45 = vld [vmem:[%s3935_s5 + $0x18] sm:$0xff]  ;;  %v1244_v56 = vld [vmem:[%s3935_s5 + $0x60] sm:$0xff] }
 0x365   :  { %v1245_v58 = vld [vmem:[%s3935_s5 + $0x68] sm:$0xff] }
 0x366   :  { %v3521_v52 = vadd.f32 %v875_v44, %v871_v47  ;;  %v870_v54 = vadd.f32 %v859_v49, %v781_v48  ;;  %v1234_v44 = vld [vmem:[%s3935_s5 + $0x10] sm:$0xff]  ;;  %v1237_v47 = vld [vmem:[%s3935_s5 + $0x28] sm:$0xff]  ;;  %v1239_v49 = vld [vmem:[%s3935_s5 + $0x38] sm:$0xff] }
 0x367   :  { %v1238_v48 = vld [vmem:[%s3935_s5 + $0x30] sm:$0xff] }
 0x368   :  { %v3526_v57 = vadd.f32 %v874_v50, %v870_v54  ;;  %2717 = vmatprep.subr.mxu0 %v3521_v52  ;;  %2728 = vmatprep.subr.mxu1 %v3521_v52  ;;  %v1240_v50 = vld [vmem:[%s3935_s5 + $0x40] sm:$0xff]  ;;  %v1242_v54 = vld [vmem:[%s3935_s5 + $0x50] sm:$0xff] }
 0x369   :  { %2718 = vmatpush3.msra.mxu0 %v3521_v52  ;;  %2729 = vmatpush3.msra.mxu1 %v3521_v52 }
 0x36a   :  { %2719 = vmatprep.subr.mxu0 %v3526_v57  ;;  %2730 = vmatprep.subr.mxu1 %v3526_v57 }
 0x36b   :  { %2720 = vmatpush3.msra.mxu0 %v3526_v57  ;;  %2731 = vmatpush3.msra.mxu1 %v3526_v57 }
 0x36c   :  { %2721 = vmatprep.subr.mxu0 %v3535_v59  ;;  %2732 = vmatprep.subr.mxu1 %v3535_v59 }
 0x36d   :  { %2722 = vmatpush3.msra.mxu0 %v3535_v59  ;;  %2733 = vmatpush3.msra.mxu1 %v3535_v59 }
 0x36e   :  { %2723 = vmatprep.subr.mxu0 %v3541_v60  ;;  %2734 = vmatprep.subr.mxu1 %v3541_v60 }
 0x36f   :  { %2724 = vmatpush3.msra.mxu0 %v3541_v60  ;;  %2735 = vmatpush3.msra.mxu1 %v3541_v60 }
 0x370   :  { %2726 = vmatmul.mubr.msk.f32.vlgmr.msra.gmra.mxu0 %vm257_vm0, %v881_v61  ;;  %2737 = vmatmul.mubr.msk.f32.vlgmr.msra.gmra.mxu1 %vm257_vm0, %v964_v63  ;;  %v1246_v61 = vld [vmem:[%s3935_s5 + $0x70] sm:$0xff]  ;;  %v1247_v63 = vld [vmem:[%s3935_s5 + $0x78] sm:$0xff] }
 0x371   :  { %2739 = vmatprep.subr.mxu0 %v1063_v1  ;;  %2774 = vmatprep.subr.mxu1 %v1154_v4 }
 0x372   :  { %2740 = vmatpush3.msra.mxu0 %v1063_v1  ;;  %2775 = vmatpush3.msra.mxu1 %v1154_v4  ;;  %v1474_v1 = vld [vmem:[%s3933_s2 + $0x70] sm:$0xff]  ;;  %v1558_v4 = vld [vmem:[%s3935_s5 + $0x138] sm:$0xff] }
 0x373   :  { %2741 = vmatprep.subr.mxu0 %v1062_v5  ;;  %2776 = vmatprep.subr.mxu1 %v1153_v6 }
 0x374   :  { %2742 = vmatpush3.msra.mxu0 %v1062_v5  ;;  %2777 = vmatpush3.msra.mxu1 %v1153_v6  ;;  %v1557_v5 = vld [vmem:[%s3935_s5 + $0x130] sm:$0xff]  ;;  %v1556_v6 = vld [vmem:[%s3935_s5 + $0x128] sm:$0xff] }
 0x375   :  { %2743 = vmatprep.subr.mxu0 %v1061_v7  ;;  %2778 = vmatprep.subr.mxu1 %v1152_v10 }
 0x376   :  { %2744 = vmatpush3.msra.mxu0 %v1061_v7  ;;  %2779 = vmatpush3.msra.mxu1 %v1152_v10  ;;  %v1555_v7 = vld [vmem:[%s3935_s5 + $0x120] sm:$0xff]  ;;  %v1554_v10 = vld [vmem:[%s3935_s5 + $0x118] sm:$0xff] }
 0x377   :  { %2745 = vmatprep.subr.mxu0 %v1060_v14  ;;  %2780 = vmatprep.subr.mxu1 %v1151_v16 }
 0x378   :  { %2746 = vmatpush3.msra.mxu0 %v1060_v14  ;;  %2781 = vmatpush3.msra.mxu1 %v1151_v16  ;;  %v1553_v14 = vld [vmem:[%s3935_s5 + $0x110] sm:$0xff] }
 0x379   :  { %2747 = vmatprep.subr.mxu0 %v1059_v17  ;;  %2782 = vmatprep.subr.mxu1 %v1150_v18 }
 0x37a   :  { %2748 = vmatpush3.msra.mxu0 %v1059_v17  ;;  %2783 = vmatpush3.msra.mxu1 %v1150_v18 }
 0x37b   :  { %2749 = vmatprep.subr.mxu0 %v1058_v20  ;;  %2784 = vmatprep.subr.mxu1 %v1149_v0 }
 0x37c   :  { %2750 = vmatpush3.msra.mxu0 %v1058_v20  ;;  %2785 = vmatpush3.msra.mxu1 %v1149_v0 }
 0x37d   :  { %2751 = vmatprep.subr.mxu0 %v1057_v21  ;;  %2786 = vmatprep.subr.mxu1 %v1148_v22 }
 0x37e   :  { %2752 = vmatpush3.msra.mxu0 %v1057_v21  ;;  %2787 = vmatpush3.msra.mxu1 %v1148_v22 }
 0x37f   :  { %2753 = vmatprep.subr.mxu0 %v1056_v62  ;;  %2788 = vmatprep.subr.mxu1 %v1147_v23 }
 0x380   :  { %2754 = vmatpush3.msra.mxu0 %v1056_v62  ;;  %2789 = vmatpush3.msra.mxu1 %v1147_v23 }
 0x381   :  { %2755 = vmatprep.subr.mxu0 %v1055_v24  ;;  %2790 = vmatprep.subr.mxu1 %v1146_v25 }
 0x382   :  { %2756 = vmatpush3.msra.mxu0 %v1055_v24  ;;  %2791 = vmatpush3.msra.mxu1 %v1146_v25 }
 0x383   :  { %2757 = vmatprep.subr.mxu0 %v1054_v26  ;;  %2792 = vmatprep.subr.mxu1 %v1145_v27 }
 0x384   :  { %2758 = vmatpush3.msra.mxu0 %v1054_v26  ;;  %2793 = vmatpush3.msra.mxu1 %v1145_v27 }
 0x385   :  { %2759 = vmatprep.subr.mxu0 %v1053_v28  ;;  %2794 = vmatprep.subr.mxu1 %v1144_v29 }
 0x386   :  { %2760 = vmatpush3.msra.mxu0 %v1053_v28  ;;  %2795 = vmatpush3.msra.mxu1 %v1144_v29  ;;  %v1457_v29 = vld [vmem:[%s3934_s3 + $0x178] sm:$0xff] }
 0x387   :  { %2761 = vmatprep.subr.mxu0 %v1052_v2  ;;  %2796 = vmatprep.subr.mxu1 %v1143_v30 }
 0x388   :  { %2762 = vmatpush3.msra.mxu0 %v1052_v2  ;;  %2797 = vmatpush3.msra.mxu1 %v1143_v30  ;;  %v1456_v30 = vld [vmem:[%s3934_s3 + $0x170] sm:$0xff] }
 0x389   :  { %2763 = vmatprep.subr.mxu0 %v1051_v31  ;;  %2798 = vmatprep.subr.mxu1 %v1142_v32 }
 0x38a   :  { %2764 = vmatpush3.msra.mxu0 %v1051_v31  ;;  %2799 = vmatpush3.msra.mxu1 %v1142_v32  ;;  %v1455_v32 = vld [vmem:[%s3934_s3 + $0x168] sm:$0xff] }
 0x38b   :  { %2765 = vmatprep.subr.mxu0 %v1050_v33  ;;  %2800 = vmatprep.subr.mxu1 %v1141_v34 }
 0x38c   :  { %2766 = vmatpush3.msra.mxu0 %v1050_v33  ;;  %2801 = vmatpush3.msra.mxu1 %v1141_v34 }
 0x38d   :  { %2767 = vmatprep.subr.mxu0 %v1049_v35  ;;  %2802 = vmatprep.subr.mxu1 %v1140_v36 }
 0x38e   :  { %2768 = vmatpush3.msra.mxu0 %v1049_v35  ;;  %2803 = vmatpush3.msra.mxu1 %v1140_v36  ;;  %v1454_v35 = vld [vmem:[%s3934_s3 + $0x160] sm:$0xff] }
 0x38f   :  { %2769 = vmatprep.subr.mxu0 %v1048_v37  ;;  %2804 = vmatprep.subr.mxu1 %v1139_v38 }
 0x390   :  { %2770 = vmatpush3.msra.mxu0 %v1048_v37  ;;  %2805 = vmatpush3.msra.mxu1 %v1139_v38  ;;  %v1453_v37 = vld [vmem:[%s3934_s3 + $0x158] sm:$0xff] }
 0x391   :  { %2872 = vmatprep.subr.mxu0 %v1558_v4 }
 0x430   :  { %v2727_v39 = vpop.f32.mrf.mxu0  ;;  %v2738_v53 = vpop.f32.mrf.mxu1 }
 0x431   :  { %v1047_v15 = vmax.f32 %v2727_v39, %v2738_v53  ;;  %v1452_v39 = vld [vmem:[%s3934_s3 + $0x150] sm:$0xff] }
 0x432   :  { %v954_v3 = vpop.f32.mrf.mxu0  ;;  %v1037_v12 = vpop.f32.mrf.mxu1 }
 0x433   :  { %v1046_v13 = vmax.f32 %v954_v3, %v1037_v12  ;;  %v1451_v3 = vld [vmem:[%s3934_s3 + $0x148] sm:$0xff] }
 0x435   :  { %2771 = vmatprep.mubr.f32.mxu0 %v1046_v13  ;;  %2806 = vmatprep.mubr.f32.mxu1 %v1046_v13  ;;  %v1450_v13 = vld [vmem:[%s3934_s3 + $0x140] sm:$0xff] }
 0x436   :  { %2772 = vmatmul.mubr.f32.vlgmr.msra.gmra.mxu0 %v1047_v15  ;;  %2807 = vmatmul.mubr.f32.vlgmr.msra.gmra.mxu1 %v1047_v15 }
 0x437   :  { %2813 = vmatprep.mubr.msk.f32.mxu1 %vm1248_vm1, %v1232_v8  ;;  %2873 = vmatpush3.msra.mxu0 %v1558_v4  ;;  %v1449_v8 = vld [vmem:[%s3934_s3 + $0x138] sm:$0xff] }
 0x438   :  { %2874 = vmatprep.subr.mxu0 %v1557_v5 }
 0x439   :  { %2875 = vmatpush3.msra.mxu0 %v1557_v5 }
 0x43a   :  { %2876 = vmatprep.subr.mxu0 %v1556_v6 }
 0x43b   :  { %2877 = vmatpush3.msra.mxu0 %v1556_v6 }
 0x43c   :  { %2878 = vmatprep.subr.mxu0 %v1555_v7 }
 0x43d   :  { %2879 = vmatpush3.msra.mxu0 %v1555_v7 }
 0x43e   :  { %2880 = vmatprep.subr.mxu0 %v1554_v10 }
 0x43f   :  { %2881 = vmatpush3.msra.mxu0 %v1554_v10  ;;  %v1644_v10 = vld [vmem:[%s3935_s5 + $0x88] sm:$0xff] }
 0x440   :  { %2882 = vmatprep.subr.mxu0 %v1553_v14 }
 0x441   :  { %2883 = vmatpush3.msra.mxu0 %v1553_v14  ;;  %v1645_v14 = vld [vmem:[%s3935_s5 + $0x90] sm:$0xff] }
 0x4f6   :  { %v2773_v19 = vpop.f32.mrf.mxu0  ;;  %v2808_v40 = vpop.f32.mrf.mxu1 }
 0x4f7   :  { %v1231_v9 = vmax.f32 %v2773_v19, %v2808_v40  ;;  %v1448_v40 = vld [vmem:[%s3934_s3 + $0x130] sm:$0xff] }
 0x4f8   :  { %v1130_v41 = vpop.f32.mrf.mxu0  ;;  %v1221_v42 = vpop.f32.mrf.mxu1 }
 0x4f9   :  { %v1230_v11 = vmax.f32 %v1130_v41, %v1221_v42  ;;  %2809 = vmatprep.subr.mxu1 %v1231_v9  ;;  %v1447_v41 = vld [vmem:[%s3934_s3 + $0x128] sm:$0xff] }
 0x4fa   :  { %2810 = vmatpush3.msra.mxu1 %v1231_v9 }
 0x4fb   :  { %2811 = vmatprep.subr.mxu1 %v1230_v11 }
 0x4fc   :  { %2812 = vmatpush3.msra.mxu1 %v1230_v11  ;;  %v1446_v11 = vld [vmem:[%s3934_s3 + $0x120] sm:$0xff] }
 0x4fd   :  { %2814 = vmatmul.mubr.msk.f32.vlgmr.msra.gmra.mxu1 %vm1248_vm1, %v1233_v43 }
 0x4fe   :  { %2816 = vmatprep.mubr.msk.f32.mxu1 %vm1248_vm1, %v1234_v44  ;;  %v1445_v44 = vld [vmem:[%s3934_s3 + $0x118] sm:$0xff] }
 0x501   :  { %2817 = vmatmul.mubr.msk.f32.gmra.mxu1 %vm1248_vm1, %v1235_v45 }
 0x502   :  { %2819 = vmatprep.mubr.msk.f32.mxu1 %vm1248_vm1, %v1236_v46  ;;  %v1444_v46 = vld [vmem:[%s3934_s3 + $0x110] sm:$0xff] }
 0x505   :  { %2820 = vmatmul.mubr.msk.f32.gmra.mxu1 %vm1248_vm1, %v1237_v47 }
 0x506   :  { %2822 = vmatprep.mubr.msk.f32.mxu1 %vm1248_vm1, %v1238_v48  ;;  %v1443_v48 = vld [vmem:[%s3934_s3 + $0x108] sm:$0xff] }
 0x509   :  { %2823 = vmatmul.mubr.msk.f32.gmra.mxu1 %vm1248_vm1, %v1239_v49 }
 0x50a   :  { %2825 = vmatprep.mubr.msk.f32.mxu1 %vm1248_vm1, %v1240_v50  ;;  %v1442_v50 = vld [vmem:[%s3934_s3 + $0x100] sm:$0xff] }
 0x50d   :  { %2826 = vmatmul.mubr.msk.f32.gmra.mxu1 %vm1248_vm1, %v1241_v51 }
 0x50e   :  { %2828 = vmatprep.mubr.msk.f32.mxu1 %vm1248_vm1, %v1242_v54 }
 0x511   :  { %2829 = vmatmul.mubr.msk.f32.gmra.mxu1 %vm1248_vm1, %v1243_v55  ;;  %v1475_v55 = vld [vmem:[%s3933_s2 + $0x78] sm:$0xff] }
 0x512   :  { %2831 = vmatprep.mubr.msk.f32.mxu1 %vm1248_vm1, %v1244_v56  ;;  %v1552_v56 = vld [vmem:[%s3935_s5 + $0x108] sm:$0xff] }
 0x513   :  { %2884 = vmatprep.subr.mxu0 %v1552_v56 }
 0x514   :  { %2885 = vmatpush3.msra.mxu0 %v1552_v56 }
 0x515   :  { %2832 = vmatmul.mubr.msk.f32.gmra.mxu1 %vm1248_vm1, %v1245_v58  ;;  %v1551_v58 = vld [vmem:[%s3935_s5 + $0x100] sm:$0xff] }
 0x516   :  { %2834 = vmatprep.mubr.msk.f32.mxu1 %vm1248_vm1, %v1246_v61  ;;  %2886 = vmatprep.subr.mxu0 %v1551_v58 }
 0x517   :  { %2887 = vmatpush3.msra.mxu0 %v1551_v58 }
 0x519   :  { %2835 = vmatmul.mubr.msk.f32.gmra.mxu1 %vm1248_vm1, %v1247_v63 }
 0x51a   :  { %2869 = vmatprep.mubr.f32.mxu1 %v1474_v1  ;;  %v1643_v1 = vld [vmem:[%s3935_s5 + $0x80] sm:$0xff] }
 0x5bd   :  { %v3740_v16 = vpop.f32.mrf.mxu1 }
 0x5be   :  { %v1459_v51 = vmul.f32 %v3740_v16, %v1443_v48  ;;  %v1646_v16 = vld [vmem:[%s3935_s5 + $0x98] sm:$0xff] }
 0x5bf   :  { %v3742_v17 = vpop.f32.mrf.mxu1 }
 0x5c0   :  { %v1458_v54 = vmul.f32 %v1442_v50, %v3742_v17  ;;  %v1647_v17 = vld [vmem:[%s3935_s5 + $0xa0] sm:$0xff] }
 0x5c1   :  { %v2818_v18 = vpop.f32.mrf.mxu1 }
 0x5c2   :  { %v1461_v47 = vmul.f32 %v2818_v18, %v1445_v44  ;;  %v1648_v18 = vld [vmem:[%s3935_s5 + $0xa8] sm:$0xff] }
 0x5c3   :  { %v3744_v20 = vpop.f32.mrf.mxu1 }
 0x5c4   :  { %v1460_v49 = vmul.f32 %v1444_v46, %v3744_v20  ;;  %v1649_v20 = vld [vmem:[%s3935_s5 + $0xb0] sm:$0xff] }
 0x5c5   :  { %v2821_v0 = vpop.f32.mrf.mxu1 }
 0x5c6   :  { %v1463_v43 = vmul.f32 %v2821_v0, %v1447_v41  ;;  %v1650_v0 = vld [vmem:[%s3935_s5 + $0xb8] sm:$0xff] }
 0x5c7   :  { %v1383_v21 = vpop.f32.mrf.mxu1 }
 0x5c8   :  { %v1462_v45 = vmul.f32 %v1446_v11, %v1383_v21  ;;  %v1651_v21 = vld [vmem:[%s3935_s5 + $0xc0] sm:$0xff] }
 0x5c9   :  { %v2824_v22 = vpop.f32.mrf.mxu1 }
 0x5ca   :  { %v1465_v9 = vmul.f32 %v2824_v22, %v1449_v8  ;;  %v1652_v22 = vld [vmem:[%s3935_s5 + $0xc8] sm:$0xff] }
 0x5cb   :  { %v1393_v62 = vpop.f32.mrf.mxu1 }
 0x5cc   :  { %v1464_v42 = vmul.f32 %v1448_v40, %v1393_v62  ;;  %v1653_v62 = vld [vmem:[%s3935_s5 + $0xd0] sm:$0xff] }
 0x5cd   :  { %v2827_v23 = vpop.f32.mrf.mxu1 }
 0x5ce   :  { %v1467_v15 = vmul.f32 %v2827_v23, %v1451_v3  ;;  %v1654_v23 = vld [vmem:[%s3935_s5 + $0xd8] sm:$0xff] }
 0x5cf   :  { %v1403_v24 = vpop.f32.mrf.mxu1 }
 0x5d0   :  { %v1466_v19 = vmul.f32 %v1450_v13, %v1403_v24  ;;  %v1655_v24 = vld [vmem:[%s3935_s5 + $0xe0] sm:$0xff] }
 0x5d1   :  { %v2830_v25 = vpop.f32.mrf.mxu1 }
 0x5d2   :  { %v1469_v53 = vmul.f32 %v2830_v25, %v1453_v37  ;;  %v1656_v25 = vld [vmem:[%s3935_s5 + $0xe8] sm:$0xff] }
 0x5d3   :  { %v1413_v26 = vpop.f32.mrf.mxu1 }
 0x5d4   :  { %v1468_v12 = vmul.f32 %v1452_v39, %v1413_v26  ;;  %v1657_v26 = vld [vmem:[%s3935_s5 + $0xf0] sm:$0xff] }
 0x5d5   :  { %v2833_v27 = vpop.f32.mrf.mxu1 }
 0x5d6   :  { %v1471_v36 = vmul.f32 %v2833_v27, %v1455_v32  ;;  %v1658_v27 = vld [vmem:[%s3935_s5 + $0xf8] sm:$0xff] }
 0x5d7   :  { %v1423_v28 = vpop.f32.mrf.mxu1 }
 0x5d8   :  { %v1470_v38 = vmul.f32 %v1454_v35, %v1423_v28  ;;  %v1948_v28 = vld [vmem:[%s3933_s2 + $0x40] sm:$0xff] }
 0x5d9   :  { %v2836_v2 = vpop.f32.mrf.mxu1 }
 0x5da   :  { %v1473_v31 = vmul.f32 %v2836_v2, %v1457_v29 }
 0x5db   :  { %v1433_v33 = vpop.f32.mrf.mxu1 }
 0x5dc   :  { %v1472_v34 = vmul.f32 %v1456_v30, %v1433_v33  ;;  %2837 = vmatprep.subr.mxu1 %v1473_v31 }
 0x5dd   :  { %2838 = vmatpush3.msra.mxu1 %v1473_v31 }
 0x5de   :  { %2839 = vmatprep.subr.mxu1 %v1472_v34 }
 0x5df   :  { %2840 = vmatpush3.msra.mxu1 %v1472_v34 }
 0x5e0   :  { %2841 = vmatprep.subr.mxu1 %v1471_v36 }
 0x5e1   :  { %2842 = vmatpush3.msra.mxu1 %v1471_v36 }
 0x5e2   :  { %2843 = vmatprep.subr.mxu1 %v1470_v38 }
 0x5e3   :  { %2844 = vmatpush3.msra.mxu1 %v1470_v38 }
 0x5e4   :  { %2845 = vmatprep.subr.mxu1 %v1469_v53 }
 0x5e5   :  { %2846 = vmatpush3.msra.mxu1 %v1469_v53 }
 0x5e6   :  { %2847 = vmatprep.subr.mxu1 %v1468_v12 }
 0x5e7   :  { %2848 = vmatpush3.msra.mxu1 %v1468_v12 }
 0x5e8   :  { %2849 = vmatprep.subr.mxu1 %v1467_v15 }
 0x5e9   :  { %2850 = vmatpush3.msra.mxu1 %v1467_v15 }
 0x5ea   :  { %2851 = vmatprep.subr.mxu1 %v1466_v19 }
 0x5eb   :  { %2852 = vmatpush3.msra.mxu1 %v1466_v19 }
 0x5ec   :  { %2853 = vmatprep.subr.mxu1 %v1465_v9 }
 0x5ed   :  { %2854 = vmatpush3.msra.mxu1 %v1465_v9 }
 0x5ee   :  { %2855 = vmatprep.subr.mxu1 %v1464_v42 }
 0x5ef   :  { %2856 = vmatpush3.msra.mxu1 %v1464_v42 }
 0x5f0   :  { %2857 = vmatprep.subr.mxu1 %v1463_v43 }
 0x5f1   :  { %2858 = vmatpush3.msra.mxu1 %v1463_v43 }
 0x5f2   :  { %2859 = vmatprep.subr.mxu1 %v1462_v45 }
 0x5f3   :  { %2860 = vmatpush3.msra.mxu1 %v1462_v45 }
 0x5f4   :  { %2861 = vmatprep.subr.mxu1 %v1461_v47 }
 0x5f5   :  { %2862 = vmatpush3.msra.mxu1 %v1461_v47 }
 0x5f6   :  { %2863 = vmatprep.subr.mxu1 %v1460_v49 }
 0x5f7   :  { %2864 = vmatpush3.msra.mxu1 %v1460_v49 }
 0x5f8   :  { %2865 = vmatprep.subr.mxu1 %v1459_v51 }
 0x5f9   :  { %2866 = vmatpush3.msra.mxu1 %v1459_v51 }
 0x5fa   :  { %2867 = vmatprep.subr.mxu1 %v1458_v54 }
 0x5fb   :  { %2868 = vmatpush3.msra.mxu1 %v1458_v54 }
 0x5fc   :  { %2870 = vmatmul.mubr.f32.vlgmr.msra.gmra.mxu1 %v1475_v55 }
 0x6bc   :  { %v2871_v61 = vpop.f32.mrf.mxu1 }
 0x6be   :  { %v1542_v63 = vpop.f32.mrf.mxu1 }
 0x6bf   :  { %2888 = vmatprep.mubr.msk.f32.mxu0 %vm1559_vm2, %v1542_v63 }
 0x6c0   :  { %2889 = vmatmul.mubr.msk.f32.vlgmr.msra.gmra.mxu0 %vm1559_vm2, %v2871_v61 }
 0x6c1   :  { %2895 = vmatprep.mubr.msk.f32.mxu0 %vm1248_vm1, %v1643_v1 }
 0x780   :  { %v2890_v4 = vpop.f32.mrf.mxu0 }
 0x781   :  { %v1642_v5 = vmax.f32 %v2890_v4, 0.0 }
 0x782   :  { %v1632_v6 = vpop.f32.mrf.mxu0 }
 0x783   :  { %v1641_v7 = vmax.f32 %v1632_v6, 0.0  ;;  %2891 = vmatprep.subr.mxu0 %v1642_v5 }
 0x784   :  { %2892 = vmatpush3.msra.mxu0 %v1642_v5 }
 0x785   :  { %2893 = vmatprep.subr.mxu0 %v1641_v7 }
 0x786   :  { %2894 = vmatpush3.msra.mxu0 %v1641_v7 }
 0x787   :  { %2896 = vmatmul.mubr.msk.f32.vlgmr.msra.gmra.mxu0 %vm1248_vm1, %v1644_v10 }
 0x788   :  { %2898 = vmatprep.mubr.msk.f32.mxu0 %vm1248_vm1, %v1645_v14 }
 0x78b   :  { %2899 = vmatmul.mubr.msk.f32.gmra.mxu0 %vm1248_vm1, %v1646_v16 }
 0x78c   :  { %2901 = vmatprep.mubr.msk.f32.mxu0 %vm1248_vm1, %v1647_v17 }
 0x78f   :  { %2902 = vmatmul.mubr.msk.f32.gmra.mxu0 %vm1248_vm1, %v1648_v18 }
 0x790   :  { %2904 = vmatprep.mubr.msk.f32.mxu0 %vm1248_vm1, %v1649_v20 }
 0x793   :  { %2905 = vmatmul.mubr.msk.f32.gmra.mxu0 %vm1248_vm1, %v1650_v0 }
 0x794   :  { %2907 = vmatprep.mubr.msk.f32.mxu0 %vm1248_vm1, %v1651_v21 }
 0x797   :  { %2908 = vmatmul.mubr.msk.f32.gmra.mxu0 %vm1248_vm1, %v1652_v22 }
 0x798   :  { %2910 = vmatprep.mubr.msk.f32.mxu0 %vm1248_vm1, %v1653_v62 }
 0x79b   :  { %2911 = vmatmul.mubr.msk.f32.gmra.mxu0 %vm1248_vm1, %v1654_v23 }
 0x79c   :  { %2913 = vmatprep.mubr.msk.f32.mxu0 %vm1248_vm1, %v1655_v24 }
 0x79f   :  { %2914 = vmatmul.mubr.msk.f32.gmra.mxu0 %vm1248_vm1, %v1656_v25 }
 0x7a0   :  { %2916 = vmatprep.mubr.msk.f32.mxu0 %vm1248_vm1, %v1657_v26 }
 0x7a3   :  { %2917 = vmatmul.mubr.msk.f32.gmra.mxu0 %vm1248_vm1, %v1658_v27 }
 0x7a4   :  { %2951 = vmatprep.mubr.f32.mxu0 %v1948_v28 }
 0x847   :  { %v2897_v29 = vpop.f32.mrf.mxu0 }
 0x848   :  { %v2342_v4 = vmul.f32 -1.442695, %v2897_v29 }
 0x849   :  { %v1773_v2 = vpop.f32.mrf.mxu0 }
 0x84a   :  { %v2341_v7 = vmul.f32 -1.442695, %v1773_v2 }
 0x84b   :  { %v2900_v30 = vpop.f32.mrf.mxu0 }
 0x84c   :  { %v2344_v54 = vmul.f32 -1.442695, %v2900_v30 }
 0x84d   :  { %v1783_v31 = vpop.f32.mrf.mxu0 }
 0x84e   :  { %v2343_v61 = vmul.f32 -1.442695, %v1783_v31 }
 0x84f   :  { %v2903_v32 = vpop.f32.mrf.mxu0 }
 0x850   :  { %v2346_v45 = vmul.f32 -1.442695, %v2903_v32 }
 0x851   :  { %v1793_v33 = vpop.f32.mrf.mxu0 }
 0x852   :  { %v2345_v48 = vmul.f32 -1.442695, %v1793_v33 }
 0x853   :  { %v2906_v34 = vpop.f32.mrf.mxu0 }
 0x854   :  { %v2348_v43 = vmul.f32 -1.442695, %v2906_v34 }
 0x855   :  { %v1803_v35 = vpop.f32.mrf.mxu0 }
 0x856   :  { %v2347_v44 = vmul.f32 -1.442695, %v1803_v35 }
 0x857   :  { %v2909_v36 = vpop.f32.mrf.mxu0 }
 0x858   :  { %v2350_v42 = vmul.f32 -1.442695, %v2909_v36 }
 0x859   :  { %v1813_v37 = vpop.f32.mrf.mxu0 }
 0x85a   :  { %v2349_v11 = vmul.f32 -1.442695, %v1813_v37 }
 0x85b   :  { %v2912_v38 = vpop.f32.mrf.mxu0 }
 0x85c   :  { %v2352_v9 = vmul.f32 -1.442695, %v2912_v38 }
 0x85d   :  { %v1823_v39 = vpop.f32.mrf.mxu0 }
 0x85e   :  { %v2351_v41 = vmul.f32 -1.442695, %v1823_v39 }
 0x85f   :  { %v2915_v53 = vpop.f32.mrf.mxu0 }
 0x860   :  { %v2354_v12 = vmul.f32 -1.442695, %v2915_v53 }
 0x861   :  { %v1833_v3 = vpop.f32.mrf.mxu0 }
 0x862   :  { %v2353_v15 = vmul.f32 -1.442695, %v1833_v3  ;;  %2978 = vpow2.f32 %v2354_v12 }
 0x863   :  { %v2918_v13 = vpop.f32.mrf.mxu0 }
 0x864   :  { %v2356_v8 = vmul.f32 -1.442695, %v2918_v13 }
 0x865   :  { %v1843_v19 = vpop.f32.mrf.mxu0 }
 0x866   :  { %v2355_v40 = vmul.f32 -1.442695, %v1843_v19  ;;  %2980 = vpow2.f32 %v2356_v8 }
 0x867   :  { %2982 = vpow2.f32 %v2353_v15 }
 0x868   :  { %2984 = vpow2.f32 %v2355_v40 }
 0x869   :  { %2986 = vpow2.f32 %v2352_v9  ;;  %v1949_v9 = vld [vmem:[%s3933_s2 + $0x48] sm:$0xff] }
 0x86a   :  { %2988 = vpow2.f32 %v2351_v41  ;;  %v1950_v41 = vld [vmem:[%s3933_s2 + $0x50] sm:$0xff] }
 0x86b   :  { %2990 = vpow2.f32 %v2350_v42  ;;  %v1951_v42 = vld [vmem:[%s3933_s2 + $0x58] sm:$0xff] }
 0x86c   :  { %2992 = vpow2.f32 %v2349_v11  ;;  %v2038_v11 = vld [vmem:[%s3935_s5 + $0x148] sm:$0xff] }
 0x86d   :  { %2994 = vpow2.f32 %v2348_v43  ;;  %2957 = vmatprep.subr.mxu1 %v2038_v11  ;;  %v2037_v43 = vld [vmem:[%s3935_s5 + $0x140] sm:$0xff] }
 0x86e   :  { %2996 = vpow2.f32 %v2347_v44  ;;  %2958 = vmatpush3.msra.mxu1 %v2038_v11  ;;  %v2141_v44 = vld [vmem:[%s3933_s2 + $0x68] sm:$0xff] }
 0x86f   :  { %v2979_v46 = vpop.eup %2978  ;;  %2998 = vpow2.f32 %v2346_v45  ;;  %2959 = vmatprep.subr.mxu1 %v2037_v43 }
 0x870   :  { %v1913_v55 = vadd.f32 1.0, %v2979_v46  ;;  %2960 = vmatpush3.msra.mxu1 %v2037_v43 }
 0x873   :  { %v2981_v47 = vpop.eup %2980 }
 0x874   :  { %v2983_v49 = vpop.eup %2982  ;;  %v1915_v50 = vadd.f32 1.0, %v2981_v47 }
 0x875   :  { %v2985_v51 = vpop.eup %2984  ;;  %v1912_v63 = vadd.f32 1.0, %v2983_v49  ;;  %v2140_v49 = vld [vmem:[%s3933_s2 + $0x60] sm:$0xff] }
 0x876   :  { %3000 = vrcp.f32 %v1915_v50  ;;  %v1914_v56 = vadd.f32 1.0, %v2985_v51  ;;  %v2987_v58 = vpop.eup %2986 }
 0x877   :  { %3002 = vpow2.f32 %v2345_v48  ;;  %v2989_v1 = vpop.eup %2988  ;;  %v1911_v5 = vadd.f32 1.0, %v2987_v58 }
 0x878   :  { %3004 = vrcp.f32 %v1914_v56  ;;  %v2991_v6 = vpop.eup %2990  ;;  %v1910_v10 = vadd.f32 1.0, %v2989_v1 }
 0x879   :  { %3006 = vpow2.f32 %v2344_v54  ;;  %v2993_v14 = vpop.eup %2992  ;;  %v1909_v16 = vadd.f32 1.0, %v2991_v6 }
 0x87a   :  { %3008 = vrcp.f32 %v1913_v55  ;;  %v2995_v17 = vpop.eup %2994  ;;  %v1908_v18 = vadd.f32 1.0, %v2993_v14 }
 0x87b   :  { %3010 = vpow2.f32 %v2343_v61  ;;  %v2997_v20 = vpop.eup %2996  ;;  %v1907_v21 = vadd.f32 1.0, %v2995_v17 }
 0x87c   :  { %3012 = vrcp.f32 %v1912_v63  ;;  %v2999_v0 = vpop.eup %2998  ;;  %v1906_v23 = vadd.f32 1.0, %v2997_v20 }
 0x87d   :  { %3014 = vpow2.f32 %v2342_v4  ;;  %v1905_v26 = vadd.f32 1.0, %v2999_v0 }
 0x87e   :  { %3016 = vrcp.f32 %v1911_v5 }
 0x87f   :  { %3018 = vpow2.f32 %v2341_v7 }
 0x880   :  { %3020 = vrcp.f32 %v1910_v10 }
 0x881   :  { %3022 = vrcp.f32 %v1909_v16 }
 0x882   :  { %3024 = vrcp.f32 %v1908_v18 }
 0x883   :  { %v3001_v22 = vpop.eup %3000  ;;  %3026 = vrcp.f32 %v1907_v21 }
 0x884   :  { %v3003_v62 = vpop.eup %3002  ;;  %2919 = vmatprep.subr.mxu0 %v3001_v22  ;;  %3028 = vrcp.f32 %v1906_v23 }
 0x885   :  { %v3005_v24 = vpop.eup %3004  ;;  %2920 = vmatpush3.msra.mxu0 %v3001_v22  ;;  %v1904_v29 = vadd.f32 1.0, %v3003_v62  ;;  %3030 = vrcp.f32 %v1905_v26 }
 0x886   :  { %v3007_v25 = vpop.eup %3006  ;;  %2921 = vmatprep.subr.mxu0 %v3005_v24 }
 0x887   :  { %v3009_v27 = vpop.eup %3008  ;;  %2922 = vmatpush3.msra.mxu0 %v3005_v24  ;;  %v1903_v31 = vadd.f32 1.0, %v3007_v25  ;;  %3032 = vrcp.f32 %v1904_v29 }
 0x888   :  { %v3011_v28 = vpop.eup %3010  ;;  %2923 = vmatprep.subr.mxu0 %v3009_v27 }
 0x889   :  { %v3013_v2 = vpop.eup %3012  ;;  %2924 = vmatpush3.msra.mxu0 %v3009_v27  ;;  %v1902_v34 = vadd.f32 1.0, %v3011_v28  ;;  %3034 = vrcp.f32 %v1903_v31 }
 0x88a   :  { %v3015_v30 = vpop.eup %3014  ;;  %2925 = vmatprep.subr.mxu0 %v3013_v2 }
 0x88b   :  { %v3017_v32 = vpop.eup %3016  ;;  %2926 = vmatpush3.msra.mxu0 %v3013_v2  ;;  %v1901_v36 = vadd.f32 1.0, %v3015_v30  ;;  %3036 = vrcp.f32 %v1902_v34 }
 0x88c   :  { %v3019_v33 = vpop.eup %3018  ;;  %2927 = vmatprep.subr.mxu0 %v3017_v32 }
 0x88d   :  { %v3021_v35 = vpop.eup %3020  ;;  %2928 = vmatpush3.msra.mxu0 %v3017_v32  ;;  %v1900_v38 = vadd.f32 1.0, %v3019_v33  ;;  %3038 = vrcp.f32 %v1901_v36 }
 0x88e   :  { %2929 = vmatprep.subr.mxu0 %v3021_v35  ;;  %v3023_v37 = vpop.eup %3022 }
 0x88f   :  { %2930 = vmatpush3.msra.mxu0 %v3021_v35  ;;  %v3025_v39 = vpop.eup %3024  ;;  %3040 = vrcp.f32 %v1900_v38  ;;  %v3068_v38 = vld [vmem:[%s3931_s0 + $0x18] sm:$0xff] }
 0x890   :  { %2931 = vmatprep.subr.mxu0 %v3023_v37  ;;  %v3027_v53 = vpop.eup %3026 }
 0x891   :  { %2932 = vmatpush3.msra.mxu0 %v3023_v37  ;;  %v3029_v3 = vpop.eup %3028 }
 0x892   :  { %2933 = vmatprep.subr.mxu0 %v3025_v39  ;;  %v3031_v12 = vpop.eup %3030 }
 0x893   :  { %2934 = vmatpush3.msra.mxu0 %v3025_v39 }
 0x894   :  { %2935 = vmatprep.subr.mxu0 %v3027_v53  ;;  %v3033_v13 = vpop.eup %3032 }
 0x895   :  { %2936 = vmatpush3.msra.mxu0 %v3027_v53 }
 0x896   :  { %2937 = vmatprep.subr.mxu0 %v3029_v3  ;;  %v3035_v15 = vpop.eup %3034 }
 0x897   :  { %2938 = vmatpush3.msra.mxu0 %v3029_v3  ;;  %v3069_v3 = vld [vmem:[%s3931_s0 + $0x10] sm:$0xff] }
 0x898   :  { %2939 = vmatprep.subr.mxu0 %v3031_v12  ;;  %v3037_v8 = vpop.eup %3036 }
 0x899   :  { %2940 = vmatpush3.msra.mxu0 %v3031_v12 }
 0x89a   :  { %2941 = vmatprep.subr.mxu0 %v3033_v13  ;;  %v3039_v19 = vpop.eup %3038 }
 0x89b   :  { %2942 = vmatpush3.msra.mxu0 %v3033_v13 }
 0x89c   :  { %2943 = vmatprep.subr.mxu0 %v3035_v15  ;;  %v3041_v40 = vpop.eup %3040 }
 0x89d   :  { %2944 = vmatpush3.msra.mxu0 %v3035_v15 }
 0x89e   :  { %2945 = vmatprep.subr.mxu0 %v3037_v8 }
 0x89f   :  { %2946 = vmatpush3.msra.mxu0 %v3037_v8 }
 0x8a0   :  { %2947 = vmatprep.subr.mxu0 %v3039_v19 }
 0x8a1   :  { %2948 = vmatpush3.msra.mxu0 %v3039_v19 }
 0x8a2   :  { %2949 = vmatprep.subr.mxu0 %v3041_v40 }
 0x8a3   :  { %2950 = vmatpush3.msra.mxu0 %v3041_v40 }
 0x8a4   :  { %2952 = vmatmul.mubr.f32.vlgmr.msra.gmra.mxu0 %v1949_v9  ;;  %2967 = vmatprep.subr.mxu0 %v2141_v44 }
 0x8a5   :  { %2954 = vmatprep.mubr.f32.mxu0 %v1950_v41  ;;  %2968 = vmatpush3.msra.mxu0 %v2141_v44 }
 0x8a6   :  { %2969 = vmatprep.subr.mxu0 %v2140_v49 }
 0x8a7   :  { %2970 = vmatpush3.msra.mxu0 %v2140_v49 }
 0x8a8   :  { %2955 = vmatmul.mubr.f32.gmra.mxu0 %v1951_v42 }
 0x964   :  { %v2953_v45 = vpop.f32.mrf.mxu0 }
 0x966   :  { %v2018_v46 = vpop.f32.mrf.mxu0 }
 0x967   :  { %2961 = vmatprep.mubr.msk.f32.mxu1 %vm1248_vm1, %v2018_v46 }
 0x968   :  { %v2956_v47 = vpop.f32.mrf.mxu0  ;;  %2962 = vmatmul.mubr.msk.f32.vlgmr.msra.gmra.mxu1 %vm1248_vm1, %v2953_v45 }
 0x96a   :  { %v2028_v48 = vpop.f32.mrf.mxu0 }
 0x96b   :  { %2964 = vmatprep.mubr.msk.f32.mxu1 %vm1248_vm1, %v2028_v48 }
 0x96c   :  { %2965 = vmatmul.mubr.msk.f32.gmra.mxu1 %vm1248_vm1, %v2956_v47 }
 0xa28   :  { %v2963_v50 = vpop.f32.mrf.mxu1 }
 0xa29   :  { %v2137_v55 = vmax.f32 %v2963_v50, 0.0 }
 0xa2a   :  { %v2117_v51 = vpop.f32.mrf.mxu1 }
 0xa2b   :  { %v2136_v54 = vmax.f32 %v2117_v51, 0.0 }
 0xa2c   :  { %v2966_v56 = vpop.f32.mrf.mxu1 }
 0xa2d   :  { %2971 = vmatprep.mubr.msk.f32.mxu0 %vm1248_vm1, %v2136_v54  ;;  %v2139_v63 = vmax.f32 %v2966_v56, 0.0 }
 0xa2e   :  { %v2127_v58 = vpop.f32.mrf.mxu1  ;;  %2972 = vmatmul.mubr.msk.f32.vlgmr.msra.gmra.mxu0 %vm1248_vm1, %v2137_v55 }
 0xa2f   :  { %v2138_v61 = vmax.f32 %v2127_v58, 0.0 }
 0xa31   :  { %2974 = vmatprep.mubr.msk.f32.mxu0 %vm1248_vm1, %v2138_v61 }
 0xa32   :  { %2975 = vmatmul.mubr.msk.f32.gmra.mxu0 %vm1248_vm1, %v2139_v63 }
 0xaee   :  { %v2973_v1 = vpop.f32.mrf.mxu0 }
 0xaef   :  { %v2366_v4 = vmul.f32 -1.442695, %v2973_v1 }
 0xaf0   :  { %v2220_v5 = vpop.f32.mrf.mxu0 }
 0xaf1   :  { %3042 = vpow2.f32 %v2366_v4  ;;  %v2365_v6 = vmul.f32 -1.442695, %v2220_v5 }
 0xaf2   :  { %v2976_v7 = vpop.f32.mrf.mxu0 }
 0xaf3   :  { %3044 = vpow2.f32 %v2365_v6  ;;  %v2368_v10 = vmul.f32 -1.442695, %v2976_v7 }
 0xaf4   :  { %v2230_v14 = vpop.f32.mrf.mxu0 }
 0xaf5   :  { %3046 = vpow2.f32 %v2368_v10  ;;  %v2367_v16 = vmul.f32 -1.442695, %v2230_v14 }
 0xaf7   :  { %3048 = vpow2.f32 %v2367_v16 }
 0xafe   :  { %v3043_v17 = vpop.eup %3042 }
 0xaff   :  { %v2252_v18 = vadd.f32 1.0, %v3043_v17 }
 0xb00   :  { %v3045_v20 = vpop.eup %3044 }
 0xb01   :  { %3050 = vrcp.f32 %v2252_v18  ;;  %v2251_v0 = vadd.f32 1.0, %v3045_v20 }
 0xb02   :  { %v3047_v21 = vpop.eup %3046 }
 0xb03   :  { %3052 = vrcp.f32 %v2251_v0  ;;  %v2254_v22 = vadd.f32 1.0, %v3047_v21 }
 0xb04   :  { %v3049_v62 = vpop.eup %3048 }
 0xb05   :  { %3054 = vrcp.f32 %v2254_v22  ;;  %v2253_v23 = vadd.f32 1.0, %v3049_v62 }
 0xb07   :  { %3056 = vrcp.f32 %v2253_v23 }
 0xb0e   :  { %v3051_v24 = vpop.eup %3050 }
 0xb0f   :  { %v2264_v25 = vmul.f32 %v3051_v24, %v3535_v59  ;;  %v3066_v59 = vld [vmem:[%s3931_s0 + $0x8] sm:$0xff] }
 0xb10   :  { %v3053_v26 = vpop.eup %3052 }
 0xb11   :  { %3058 = vtanh.f32 %v2264_v25  ;;  %v2263_v27 = vmul.f32 %v3053_v26, %v3541_v60 }
 0xb12   :  { %v3055_v28 = vpop.eup %3054 }
 0xb13   :  { %3060 = vtanh.f32 %v2263_v27  ;;  %v2266_v29 = vmul.f32 %v3055_v28, %v3521_v52  ;;  %v3067_v52 = vld [vmem:[%s3931_s0] sm:$0xff] }
 0xb14   :  { %v3057_v2 = vpop.eup %3056 }
 0xb15   :  { %3062 = vtanh.f32 %v2266_v29  ;;  %v2265_v30 = vmul.f32 %v3057_v2, %v3526_v57 }
 0xb17   :  { %3064 = vtanh.f32 %v2265_v30 }
 0xb1e   :  { %v3059_v31 = vpop.eup %3058 }
 0xb1f   :  { %v2272_v32 = vmul.f32 %v3059_v31, %v2264_v25 }
 0xb20   :  { %v3061_v33 = vpop.eup %3060 }
 0xb21   :  { %v2276_v34 = vadd.f32 %v3066_v59, %v2272_v32  ;;  %v2271_v35 = vmul.f32 %v3061_v33, %v2263_v27 }
 0xb22   :  { %v3063_v36 = vpop.eup %3062 }
 0xb23   :  { %2280 = vst [vmem:[%s3936_s6 + $0x8] sm:$0xff] %v2276_v34  ;;  %v2275_v57 = vadd.f32 %v3067_v52, %v2271_v35  ;;  %v2274_v60 = vmul.f32 %v3063_v36, %v2266_v29 }
 0xb24   :  { %v3065_v37 = vpop.eup %3064 }
 0xb25   :  { %2279 = vst [vmem:[%s3936_s6] sm:$0xff] %v2275_v57  ;;  %v2278_v39 = vadd.f32 %v3068_v38, %v2274_v60  ;;  %v2273_v53 = vmul.f32 %v3065_v37, %v2265_v30 }
 0xb27   :  { %2282 = vst [vmem:[%s3936_s6 + $0x18] sm:$0xff] %v2278_v39  ;;  %v2277_v12 = vadd.f32 %v3069_v3, %v2273_v53 }
 0xb29   :  { %2281 = vst [vmem:[%s3936_s6 + $0x10] sm:$0xff] %v2277_v12 }

</bundles_post_ra>
